<compile_context>
chip_gen: v6e
topology: v6e:2x2x1
jax: 0.10.0
libtpu: 0.0.40
codegen_flags: <defaults>
</compile_context>

<pallas_src>
import functools
import math

import numpy as np
import jax
import jax.numpy as jnp
from jax.experimental import pallas as pl
from jax.experimental.pallas import tpu as pltpu

LANE = 128


# ----------------------------------------------------------------------------
# Kernel factory: one (batch-chunk, timestep-block) grid cell runs K steps.
#   trig_ref : SMEM (2,) = [0.5*(theta_mem+theta_in), 0.5*theta_ent]
#   x_ref    : VMEM (K, CS, 128)  raw inputs for this block of timesteps
#   u_ref    : VMEM (K, CS, 128)  uniform randoms for the Bernoulli sample
#   sin_ref  : VMEM (2, CS, 128)  incoming state planes [a, d]
#   state_s  : VMEM scratch (2, CS, 128), state carried across the T axis
# ----------------------------------------------------------------------------
def _make_kernel(K, T):
    def sqs_kernel(trig_ref, x_ref, u_ref, sin_ref,
                   meas_ref, pspike_ref, sout_ref, state_s):
        f32 = jnp.float32
        tb = pl.program_id(1)

        # ---- first timestep block: pull the incoming state into scratch ----
        @pl.when(tb == 0)
        def _():
            state_s[...] = sin_ref[...]

        tile = (x_ref.shape[1], x_ref.shape[2])
        # Hoisted scalar splats (JAX does not CSE broadcast_in_dim in loops).
        h_mi = jnp.broadcast_to(trig_ref[0], tile)    # 0.5*(theta_mem+theta_in)
        h_ent = jnp.broadcast_to(trig_ref[1], tile)   # 0.5*theta_ent

        a = state_s[0]                                # rho[0,0]  (real)
        d = state_s[1]                                # rho[2,2]  (real)

        # K timesteps per grid cell; statically unrolled (tiny live set, ~30
        # VALU ops per step, so no vreg-pressure concern).
        for k in range(K):
            x = x_ref[k]
            u = u_ref[k]

            # 1) data-dependent encoding angle; fused composite RX angles.
            ang = jnp.where(x > 0.0, x * math.pi, 0.0)
            h0 = 0.5 * ang + h_mi                     # half of ang+th_mem+th_in
            h1 = h0 + h_ent                           # ... + th_ent  (|1> block)
            c0 = jnp.cos(h0)
            s0 = jnp.sin(h0)
            c1 = jnp.cos(h1)
            s1 = jnp.sin(h1)

            # 2) evolved diagonal entries of the two memory blocks
            e00 = (c0 * c0) * a                       # rho[0,0] after gates
            e11 = (s0 * s0) * a                       # rho[1,1]
            f00 = (c1 * c1) * d                       # rho[2,2]
            f11 = (s1 * s1) * d                       # rho[3,3]

            # 3) partial trace -> spike probability, Bernoulli sample
            prob0 = e00 + f00
            om = 1.0 - prob0
            p_spike = jnp.clip(om, 0.0, 1.0)
            meas = jnp.where(u < p_spike, 1.0, 0.0).astype(f32)

            # 4) projective measurement + renormalize + partial trace.
            #    q0*q1 == 0 => the new memory state is exactly diagonal.
            #    Full-precision divide is kept (an approximate EUP reciprocal
            #    would perturb the carried state by ~1e-4 and can flip
            #    Bernoulli outcomes near the threshold); the VALU is far from
            #    saturated here so the divide is effectively free.
            actual = jnp.where(meas == 0.0, prob0, om)
            inv = 1.0 / jnp.maximum(actual, 1e-12)    # eps guards underflow
            a_new = (1.0 - meas) * (prob0 * inv)
            d_new = meas * ((e11 + f11) * inv)

            if T % K != 0:
                # Padded timesteps in the last block must not evolve the state.
                valid = (tb * K + k) < T
                a_new = jnp.where(valid, a_new, a)
                d_new = jnp.where(valid, d_new, d)

            a, d = a_new, d_new
            meas_ref[k] = meas
            pspike_ref[k] = p_spike

        state_s[0] = a
        state_s[1] = d

        # ---- emit the carried state once, after the last timestep block ----
        @pl.when(tb == pl.num_programs(1) - 1)
        def _():
            sout_ref[...] = state_s[...]

    return sqs_kernel


@functools.lru_cache(maxsize=None)
def _sqs_call(nchunks, T, K, CS):
    S_tot = nchunks * CS
    t_blocks = -(-T // K)
    T_pad = t_blocks * K
    state_spec = pl.BlockSpec((2, CS, LANE), lambda b, t: (0, b, 0))
    step_spec = pl.BlockSpec((K, CS, LANE), lambda b, t: (t, b, 0))
    call = pl.pallas_call(
        _make_kernel(K, T),
        out_shape=(
            jax.ShapeDtypeStruct((T_pad, S_tot, LANE), jnp.float32),  # meas
            jax.ShapeDtypeStruct((T_pad, S_tot, LANE), jnp.float32),  # p_spike
            jax.ShapeDtypeStruct((2, S_tot, LANE), jnp.float32),      # state out
        ),
        grid=(nchunks, t_blocks),
        in_specs=[
            pl.BlockSpec((2,), lambda b, t: (0,),
                         memory_space=pltpu.MemorySpace.SMEM),        # trig
            step_spec,                                                # x
            step_spec,                                                # u
            state_spec,                                               # state in
        ],
        out_specs=[step_spec, step_spec, state_spec],
        scratch_shapes=[pltpu.VMEM((2, CS, LANE), jnp.float32)],
        compiler_params=pltpu.CompilerParams(
            dimension_semantics=("parallel", "arbitrary")),
    )
    return jax.jit(call)


class SQSPallas:
    """Stateful wrapper mirroring the PyTorch SQS module (default flags).

    The recurrent state is kept on-device in kernel layout (2, S_tot, 128)
    float32 planes [a, d]; the complex (B, 4, 4) `full_state` is reconstructed
    lazily (its off-diagonal entries are exactly zero after any step).
    """

    def __init__(self, encoding_type="custom", surrogate_type="straight_through",
                 chunk_sublanes=8, steps_per_block=16):
        if encoding_type != "custom":
            # TODO(synk): 'RY' encoding branch (H + RY gates) not implemented.
            raise NotImplementedError("only encoding_type='custom' is implemented")
        if surrogate_type not in ("straight_through", "sigmoid"):
            raise ValueError(f"Unsupported surrogate_type: {surrogate_type}")
        # The surrogate only changes the backward pass; the forward Bernoulli
        # sample is identical for both and is what the kernel computes.
        if chunk_sublanes % 8 != 0 or chunk_sublanes <= 0:
            raise ValueError("chunk_sublanes must be a positive multiple of 8")
        if steps_per_block < 1:
            raise ValueError("steps_per_block must be >= 1")
        self.cs = chunk_sublanes
        self.steps_per_block = steps_per_block   # K: timesteps per grid cell
        self._state = None
        self._batch = None

    # -- state management -----------------------------------------------------
    def reset_memory(self):
        self._state = None
        self._batch = None

    @property
    def full_state(self):
        if self._state is None:
            return None
        B = self._batch
        a = self._state[0].reshape(-1)[:B]
        d = self._state[1].reshape(-1)[:B]
        rho = jnp.zeros((B, 4, 4), jnp.complex64)
        rho = rho.at[:, 0, 0].set(a.astype(jnp.complex64))
        rho = rho.at[:, 2, 2].set(d.astype(jnp.complex64))
        return rho

    # -- forward ----------------------------------------------------------------
    def __call__(self, x_t, theta_mem, theta_in, theta_ent, u):
        """Single timestep, module-style API: x_t (B, F) uses column 0; u (B,)."""
        B = x_t.shape[0]
        meas, p_spike = self.forward_sequence(
            jnp.reshape(x_t[:, 0], (1, B)), theta_mem, theta_in, theta_ent,
            jnp.reshape(u, (1, B)))
        return meas[0].reshape(B, 1), p_spike[0].reshape(B, 1)

    def forward_sequence(self, x_seq, theta_mem, theta_in, theta_ent, u_seq):
        """Run T recurrent timesteps fused in one pallas_call.

        x_seq, u_seq: (T, B).  Returns meas (T, B), p_spike (T, B).
        """
        T, B = x_seq.shape

        # Prefer >=2 batch chunks when the batch allows it, so the "parallel"
        # grid axis can shard across both TensorCores on v7x.
        cs = self.cs
        while cs > 8 and -(-B // (cs * LANE)) < 2:
            cs -= 8
        chunk = cs * LANE
        nchunks = max(1, -(-B // chunk))
        Bp = nchunks * chunk
        S_tot = Bp // LANE

        # Fold K timesteps per grid cell to amortize per-step pipeline overhead.
        K = max(1, min(self.steps_per_block, T))
        t_blocks = -(-T // K)
        T_pad = t_blocks * K

        if (self._state is None or self._batch != B
                or self._state.shape[1] != S_tot):
            # fresh |00><00| for every example (matches reset_memory semantics)
            state = jnp.zeros((2, S_tot, LANE), jnp.float32).at[0].set(1.0)
        else:
            state = self._state

        xp = jnp.zeros((T_pad, Bp), jnp.float32).at[:T, :B].set(
            x_seq.astype(jnp.float32)).reshape(T_pad, S_tot, LANE)
        # padding lanes/steps get u = 1.0 -> they never spike and stay benign
        up = jnp.ones((T_pad, Bp), jnp.float32).at[:T, :B].set(
            u_seq.astype(jnp.float32)).reshape(T_pad, S_tot, LANE)

        trig = jnp.asarray([0.5 * (theta_mem + theta_in), 0.5 * theta_ent],
                           jnp.float32)

        meas, p_spike, state_n = _sqs_call(nchunks, T, K, cs)(trig, xp, up, state)

        self._state, self._batch = state_n, B
        return (meas.reshape(T_pad, Bp)[:T, :B],
                p_spike.reshape(T_pad, Bp)[:T, :B])


# ----------------------------------------------------------------------------
# Pure-numpy (complex128) reference mirroring the batched PyTorch code path.
# ----------------------------------------------------------------------------
def _np_rx(theta):
    theta = np.asarray(theta, np.float64)
    c = np.cos(theta / 2)
    s = np.sin(theta / 2)
    rx = np.zeros(theta.shape + (2, 2), np.complex128)
    rx[..., 0, 0] = c
    rx[..., 0, 1] = -1j * s
    rx[..., 1, 0] = -1j * s
    rx[..., 1, 1] = c
    return rx


def _numpy_reference_step(rho, x, theta_mem, theta_in, theta_ent, u):
    B = rho.shape[0]

    def embed(gate):          # torch batched apply_gate embedding (wires [0]/[1])
        gate = np.broadcast_to(gate, (B, 2, 2))
        G = np.zeros((B, 4, 4), np.complex128)
        G[:, 0:2, 0:2] = gate
        G[:, 2:4, 2:4] = gate
        return G

    def apply(r, G):
        return G @ r @ np.conj(np.swapaxes(G, -2, -1))

    angles = np.where(x > 0, x * np.pi, 0.0)
    rho = apply(rho, embed(_np_rx(angles)))
    crx = np.eye(4, dtype=np.complex128)
    crx[2:4, 2:4] = _np_rx(np.float64(theta_ent))
    rho = apply(rho, np.broadcast_to(crx, (B, 4, 4)))
    rho = apply(rho, embed(_np_rx(np.float64(theta_mem))))
    rho = apply(rho, embed(_np_rx(np.float64(theta_in))))

    prob_0 = (rho[:, 0, 0] + rho[:, 2, 2]).real
    p_spike = np.clip(1.0 - prob_0, 0.0, 1.0)
    meas = (u < p_spike).astype(np.float64)
    dvec = np.stack([1 - meas, meas, 1 - meas, meas], axis=1)
    proj = dvec[:, :, None] * np.eye(4)[None]
    actual = np.where(meas == 0, prob_0, 1.0 - prob_0)
    rho_post = (proj @ rho @ proj) / actual[:, None, None]
    a = (rho_post[:, 0, 0] + rho_post[:, 2, 2]).real
    b = rho_post[:, 0, 1] + rho_post[:, 2, 3]
    c = rho_post[:, 1, 0] + rho_post[:, 3, 2]
    d = (rho_post[:, 1, 1] + rho_post[:, 3, 3]).real
    new = np.zeros((B, 4, 4), np.complex128)
    new[:, 0, 0] = a
    new[:, 0, 2] = b
    new[:, 2, 0] = c
    new[:, 2, 2] = d
    return meas, p_spike, new


def _numpy_reference_sequence(x_seq, theta_mem, theta_in, theta_ent, u_seq):
    T, B = x_seq.shape
    rho = np.zeros((B, 4, 4), np.complex128)
    rho[:, 0, 0] = 1.0
    meas_all = np.zeros((T, B))
    p_all = np.zeros((T, B))
    for t in range(T):
        meas_all[t], p_all[t], rho = _numpy_reference_step(
            rho, x_seq[t], theta_mem, theta_in, theta_ent, u_seq[t])
    return meas_all, p_all, rho


if __name__ == "__main__":
    key = jax.random.PRNGKey(0)
    kx, ku = jax.random.split(key)
    B, T, F = 8, 3, 4
    x_t = jax.random.normal(kx, (T, B, F), dtype=jnp.float32)
    u = jax.random.uniform(ku, (T, B), dtype=jnp.float32)
    theta_mem, theta_in, theta_ent = 0.3, 0.7, 1.1

    model = SQSPallas(encoding_type="custom", surrogate_type="straight_through")

    # fused multi-timestep recurrence: one pallas_call for all T steps
    meas_seq, p_seq = model.forward_sequence(
        x_t[:, :, 0], theta_mem, theta_in, theta_ent, u)
    jax.block_until_ready((meas_seq, p_seq))
    full_state = model.full_state

    meas_ref, p_ref, state_ref = _numpy_reference_sequence(
        np.asarray(x_t[:, :, 0], np.float64), theta_mem, theta_in, theta_ent,
        np.asarray(u, np.float64))

    assert meas_seq.shape == (T, B) and p_seq.shape == (T, B)
    assert np.allclose(np.asarray(p_seq), p_ref, atol=1e-5)
    assert np.array_equal(np.asarray(meas_seq, np.float64), meas_ref)
    assert np.allclose(np.asarray(full_state), state_ref, atol=2e-3)

    # longer sequence exercising multiple timestep blocks + a masked tail
    # (T not a multiple of the per-grid-cell step count K)
    T2 = 11
    kx2, ku2 = jax.random.split(jax.random.PRNGKey(1))
    x2 = jax.random.normal(kx2, (T2, B), dtype=jnp.float32)
    u2 = jax.random.uniform(ku2, (T2, B), dtype=jnp.float32)
    model2 = SQSPallas(steps_per_block=4)
    meas2, p2 = model2.forward_sequence(x2, theta_mem, theta_in, theta_ent, u2)
    jax.block_until_ready((meas2, p2))
    meas2_ref, p2_ref, state2_ref = _numpy_reference_sequence(
        np.asarray(x2, np.float64), theta_mem, theta_in, theta_ent,
        np.asarray(u2, np.float64))
    assert np.allclose(np.asarray(p2), p2_ref, atol=1e-4)
    assert np.array_equal(np.asarray(meas2, np.float64), meas2_ref)
    assert np.allclose(np.asarray(model2.full_state), state2_ref, atol=2e-3)

    # single-step, module-style API (x_t[b] has a feature dim, column 0 used)
    model.reset_memory()
    meas0, p0 = model(x_t[0], theta_mem, theta_in, theta_ent, u[0])
    jax.block_until_ready((meas0, p0))
    assert meas0.shape == (B, 1) and p0.shape == (B, 1)
    assert np.allclose(np.asarray(p0)[:, 0], p_ref[0], atol=1e-5)
    assert np.array_equal(np.asarray(meas0, np.float64)[:, 0], meas_ref[0])
    print("KERNEL_OK")
</pallas_src>

<mosaic_0001>
module attributes {stable_mosaic.version = 11 : i64} {
  func.func @sqs_kernel(%arg0: i32, %arg1: i32, %arg2: memref<2xf32, #tpu.memory_space<smem>>, %arg3: memref<3x8x128xf32, #tpu.memory_space<vmem>>, %arg4: memref<3x8x128xf32, #tpu.memory_space<vmem>>, %arg5: memref<2x8x128xf32, #tpu.memory_space<vmem>>, %arg6: memref<3x8x128xf32, #tpu.memory_space<vmem>>, %arg7: memref<3x8x128xf32, #tpu.memory_space<vmem>>, %arg8: memref<2x8x128xf32, #tpu.memory_space<vmem>>, %arg9: memref<2x8x128xf32, #tpu.memory_space<vmem>>) attributes {dimension_semantics = [#tpu.dimension_semantics<parallel>, #tpu.dimension_semantics<arbitrary>], iteration_bounds = array<i64: 1, 1>, scalar_prefetch = 0 : i64, scratch_operands = 1 : i64, tpu.core_type = #tpu.core_type<tc>, window_params = [{transform_indices = @transform_0, window_bounds = array<i64: 2>}, {transform_indices = @transform_1, window_bounds = array<i64: 3, 8, 128>}, {transform_indices = @transform_2, window_bounds = array<i64: 3, 8, 128>}, {transform_indices = @transform_3, window_bounds = array<i64: 2, 8, 128>}, {transform_indices = @transform_4, window_bounds = array<i64: 3, 8, 128>}, {transform_indices = @transform_5, window_bounds = array<i64: 3, 8, 128>}, {transform_indices = @transform_6, window_bounds = array<i64: 2, 8, 128>}]} {
    %c0_i32 = arith.constant 0 : i32
    %0 = arith.cmpi eq, %arg1, %c0_i32 : i32
    %1 = arith.extui %0 : i1 to i32
    %c0_i32_0 = arith.constant 0 : i32
    %2 = arith.cmpi ne, %1, %c0_i32_0 : i32
    scf.if %2 {
      %c0_88 = arith.constant 0 : index
      %c0_89 = arith.constant 0 : index
      %c0_90 = arith.constant 0 : index
      %191 = vector.load %arg5[%c0_88, %c0_89, %c0_90] : memref<2x8x128xf32, #tpu.memory_space<vmem>>, vector<2x8x128xf32>
      %c0_91 = arith.constant 0 : index
      %c0_92 = arith.constant 0 : index
      %c0_93 = arith.constant 0 : index
      %192 = vector.load %arg9[%c0_91, %c0_92, %c0_93] : memref<2x8x128xf32, #tpu.memory_space<vmem>>, vector<2x8x128xf32>
      tpu.vector_store %arg9[%c0_91, %c0_92, %c0_93], %191 {strides = array<i32>} : memref<2x8x128xf32, #tpu.memory_space<vmem>>, vector<2x8x128xf32>,
    } else {
    }
    %c0 = arith.constant 0 : index
    %3 = memref.load %arg2[%c0] : memref<2xf32, #tpu.memory_space<smem>>
    %4 = vector.broadcast %3 : f32 to vector<8x128xf32>
    %c1 = arith.constant 1 : index
    %5 = memref.load %arg2[%c1] : memref<2xf32, #tpu.memory_space<smem>>
    %6 = vector.broadcast %5 : f32 to vector<8x128xf32>
    %c0_1 = arith.constant 0 : index
    %c0_2 = arith.constant 0 : index
    %c0_3 = arith.constant 0 : index
    %7 = vector.load %arg9[%c0_1, %c0_2, %c0_3] : memref<2x8x128xf32, #tpu.memory_space<vmem>>, vector<1x8x128xf32>
    %8 = vector.shape_cast %7 : vector<1x8x128xf32> to vector<8x128xf32>
    %c1_4 = arith.constant 1 : index
    %c0_5 = arith.constant 0 : index
    %c0_6 = arith.constant 0 : index
    %9 = vector.load %arg9[%c1_4, %c0_5, %c0_6] : memref<2x8x128xf32, #tpu.memory_space<vmem>>, vector<1x8x128xf32>
    %10 = vector.shape_cast %9 : vector<1x8x128xf32> to vector<8x128xf32>
    %c0_7 = arith.constant 0 : index
    %c0_8 = arith.constant 0 : index
    %c0_9 = arith.constant 0 : index
    %11 = vector.load %arg3[%c0_7, %c0_8, %c0_9] : memref<3x8x128xf32, #tpu.memory_space<vmem>>, vector<1x8x128xf32>
    %12 = vector.shape_cast %11 : vector<1x8x128xf32> to vector<8x128xf32>
    %c0_10 = arith.constant 0 : index
    %c0_11 = arith.constant 0 : index
    %c0_12 = arith.constant 0 : index
    %13 = vector.load %arg4[%c0_10, %c0_11, %c0_12] : memref<3x8x128xf32, #tpu.memory_space<vmem>>, vector<1x8x128xf32>
    %14 = vector.shape_cast %13 : vector<1x8x128xf32> to vector<8x128xf32>
    %cst = arith.constant 0.000000e+00 : f32
    %15 = vector.broadcast %cst : f32 to vector<8x128xf32>
    %16 = arith.cmpf ogt, %12, %15 : vector<8x128xf32>
    %cst_13 = arith.constant 3.14159274 : f32
    %17 = vector.broadcast %cst_13 : f32 to vector<8x128xf32>
    %18 = arith.mulf %12, %17 : vector<8x128xf32>
    %cst_14 = arith.constant 0.000000e+00 : f32
    %19 = vector.broadcast %cst_14 : f32 to vector<8x128xf32>
    %20 = arith.select %16, %18, %19 : vector<8x128xi1>, vector<8x128xf32>
    %cst_15 = arith.constant 5.000000e-01 : f32
    %21 = vector.broadcast %cst_15 : f32 to vector<8x128xf32>
    %22 = arith.mulf %21, %20 : vector<8x128xf32>
    %23 = arith.addf %22, %4 : vector<8x128xf32>
    %24 = arith.addf %23, %6 : vector<8x128xf32>
    %25 = math.cos %23 : vector<8x128xf32>
    %26 = math.sin %23 : vector<8x128xf32>
    %27 = math.cos %24 : vector<8x128xf32>
    %28 = math.sin %24 : vector<8x128xf32>
    %29 = arith.mulf %25, %25 : vector<8x128xf32>
    %30 = arith.mulf %29, %8 : vector<8x128xf32>
    %31 = arith.mulf %26, %26 : vector<8x128xf32>
    %32 = arith.mulf %31, %8 : vector<8x128xf32>
    %33 = arith.mulf %27, %27 : vector<8x128xf32>
    %34 = arith.mulf %33, %10 : vector<8x128xf32>
    %35 = arith.mulf %28, %28 : vector<8x128xf32>
    %36 = arith.mulf %35, %10 : vector<8x128xf32>
    %37 = arith.addf %30, %34 : vector<8x128xf32>
    %cst_16 = arith.constant 1.000000e+00 : f32
    %38 = vector.broadcast %cst_16 : f32 to vector<8x128xf32>
    %39 = arith.subf %38, %37 : vector<8x128xf32>
    %cst_17 = arith.constant 0.000000e+00 : f32
    %cst_18 = arith.constant 1.000000e+00 : f32
    %40 = vector.broadcast %cst_17 : f32 to vector<8x128xf32>
    %41 = arith.maximumf %40, %39 : vector<8x128xf32>
    %42 = vector.broadcast %cst_18 : f32 to vector<8x128xf32>
    %43 = arith.minimumf %42, %41 : vector<8x128xf32>
    %44 = arith.cmpf olt, %14, %43 : vector<8x128xf32>
    %cst_19 = arith.constant 1.000000e+00 : f32
    %cst_20 = arith.constant 0.000000e+00 : f32
    %45 = vector.broadcast %cst_19 : f32 to vector<8x128xf32>
    %46 = vector.broadcast %cst_20 : f32 to vector<8x128xf32>
    %47 = arith.select %44, %45, %46 : vector<8x128xi1>, vector<8x128xf32>
    %cst_21 = arith.constant 0.000000e+00 : f32
    %48 = vector.broadcast %cst_21 : f32 to vector<8x128xf32>
    %49 = arith.cmpf oeq, %47, %48 : vector<8x128xf32>
    %50 = arith.select %49, %37, %39 : vector<8x128xi1>, vector<8x128xf32>
    %cst_22 = arith.constant 9.99999996E-13 : f32
    %51 = vector.broadcast %cst_22 : f32 to vector<8x128xf32>
    %52 = arith.maximumf %50, %51 : vector<8x128xf32>
    %cst_23 = arith.constant 1.000000e+00 : f32
    %53 = vector.broadcast %cst_23 : f32 to vector<8x128xf32>
    %54 = arith.divf %53, %52 : vector<8x128xf32>
    %cst_24 = arith.constant 1.000000e+00 : f32
    %55 = vector.broadcast %cst_24 : f32 to vector<8x128xf32>
    %56 = arith.subf %55, %47 : vector<8x128xf32>
    %57 = arith.mulf %37, %54 : vector<8x128xf32>
    %58 = arith.mulf %56, %57 : vector<8x128xf32>
    %59 = arith.addf %32, %36 : vector<8x128xf32>
    %60 = arith.mulf %59, %54 : vector<8x128xf32>
    %61 = arith.mulf %47, %60 : vector<8x128xf32>
    %c0_25 = arith.constant 0 : index
    %c0_26 = arith.constant 0 : index
    %c0_27 = arith.constant 0 : index
    %62 = vector.load %arg6[%c0_25, %c0_26, %c0_27] : memref<3x8x128xf32, #tpu.memory_space<vmem>>, vector<1x8x128xf32>
    %63 = vector.shape_cast %62 : vector<1x8x128xf32> to vector<8x128xf32>
    %64 = vector.shape_cast %47 : vector<8x128xf32> to vector<1x8x128xf32>
    tpu.vector_store %arg6[%c0_25, %c0_26, %c0_27], %64 {strides = array<i32>} : memref<3x8x128xf32, #tpu.memory_space<vmem>>, vector<1x8x128xf32>,
    %c0_28 = arith.constant 0 : index
    %c0_29 = arith.constant 0 : index
    %c0_30 = arith.constant 0 : index
    %65 = vector.load %arg7[%c0_28, %c0_29, %c0_30] : memref<3x8x128xf32, #tpu.memory_space<vmem>>, vector<1x8x128xf32>
    %66 = vector.shape_cast %65 : vector<1x8x128xf32> to vector<8x128xf32>
    %67 = vector.shape_cast %43 : vector<8x128xf32> to vector<1x8x128xf32>
    tpu.vector_store %arg7[%c0_28, %c0_29, %c0_30], %67 {strides = array<i32>} : memref<3x8x128xf32, #tpu.memory_space<vmem>>, vector<1x8x128xf32>,
    %c1_31 = arith.constant 1 : index
    %c0_32 = arith.constant 0 : index
    %c0_33 = arith.constant 0 : index
    %68 = vector.load %arg3[%c1_31, %c0_32, %c0_33] : memref<3x8x128xf32, #tpu.memory_space<vmem>>, vector<1x8x128xf32>
    %69 = vector.shape_cast %68 : vector<1x8x128xf32> to vector<8x128xf32>
    %c1_34 = arith.constant 1 : index
    %c0_35 = arith.constant 0 : index
    %c0_36 = arith.constant 0 : index
    %70 = vector.load %arg4[%c1_34, %c0_35, %c0_36] : memref<3x8x128xf32, #tpu.memory_space<vmem>>, vector<1x8x128xf32>
    %71 = vector.shape_cast %70 : vector<1x8x128xf32> to vector<8x128xf32>
    %cst_37 = arith.constant 0.000000e+00 : f32
    %72 = vector.broadcast %cst_37 : f32 to vector<8x128xf32>
    %73 = arith.cmpf ogt, %69, %72 : vector<8x128xf32>
    %cst_38 = arith.constant 3.14159274 : f32
    %74 = vector.broadcast %cst_38 : f32 to vector<8x128xf32>
    %75 = arith.mulf %69, %74 : vector<8x128xf32>
    %cst_39 = arith.constant 0.000000e+00 : f32
    %76 = vector.broadcast %cst_39 : f32 to vector<8x128xf32>
    %77 = arith.select %73, %75, %76 : vector<8x128xi1>, vector<8x128xf32>
    %cst_40 = arith.constant 5.000000e-01 : f32
    %78 = vector.broadcast %cst_40 : f32 to vector<8x128xf32>
    %79 = arith.mulf %78, %77 : vector<8x128xf32>
    %80 = arith.addf %79, %4 : vector<8x128xf32>
    %81 = arith.addf %80, %6 : vector<8x128xf32>
    %82 = math.cos %80 : vector<8x128xf32>
    %83 = math.sin %80 : vector<8x128xf32>
    %84 = math.cos %81 : vector<8x128xf32>
    %85 = math.sin %81 : vector<8x128xf32>
    %86 = arith.mulf %82, %82 : vector<8x128xf32>
    %87 = arith.mulf %86, %58 : vector<8x128xf32>
    %88 = arith.mulf %83, %83 : vector<8x128xf32>
    %89 = arith.mulf %88, %58 : vector<8x128xf32>
    %90 = arith.mulf %84, %84 : vector<8x128xf32>
    %91 = arith.mulf %90, %61 : vector<8x128xf32>
    %92 = arith.mulf %85, %85 : vector<8x128xf32>
    %93 = arith.mulf %92, %61 : vector<8x128xf32>
    %94 = arith.addf %87, %91 : vector<8x128xf32>
    %cst_41 = arith.constant 1.000000e+00 : f32
    %95 = vector.broadcast %cst_41 : f32 to vector<8x128xf32>
    %96 = arith.subf %95, %94 : vector<8x128xf32>
    %cst_42 = arith.constant 0.000000e+00 : f32
    %cst_43 = arith.constant 1.000000e+00 : f32
    %97 = vector.broadcast %cst_42 : f32 to vector<8x128xf32>
    %98 = arith.maximumf %97, %96 : vector<8x128xf32>
    %99 = vector.broadcast %cst_43 : f32 to vector<8x128xf32>
    %100 = arith.minimumf %99, %98 : vector<8x128xf32>
    %101 = arith.cmpf olt, %71, %100 : vector<8x128xf32>
    %cst_44 = arith.constant 1.000000e+00 : f32
    %cst_45 = arith.constant 0.000000e+00 : f32
    %102 = vector.broadcast %cst_44 : f32 to vector<8x128xf32>
    %103 = vector.broadcast %cst_45 : f32 to vector<8x128xf32>
    %104 = arith.select %101, %102, %103 : vector<8x128xi1>, vector<8x128xf32>
    %cst_46 = arith.constant 0.000000e+00 : f32
    %105 = vector.broadcast %cst_46 : f32 to vector<8x128xf32>
    %106 = arith.cmpf oeq, %104, %105 : vector<8x128xf32>
    %107 = arith.select %106, %94, %96 : vector<8x128xi1>, vector<8x128xf32>
    %cst_47 = arith.constant 9.99999996E-13 : f32
    %108 = vector.broadcast %cst_47 : f32 to vector<8x128xf32>
    %109 = arith.maximumf %107, %108 : vector<8x128xf32>
    %cst_48 = arith.constant 1.000000e+00 : f32
    %110 = vector.broadcast %cst_48 : f32 to vector<8x128xf32>
    %111 = arith.divf %110, %109 : vector<8x128xf32>
    %cst_49 = arith.constant 1.000000e+00 : f32
    %112 = vector.broadcast %cst_49 : f32 to vector<8x128xf32>
    %113 = arith.subf %112, %104 : vector<8x128xf32>
    %114 = arith.mulf %94, %111 : vector<8x128xf32>
    %115 = arith.mulf %113, %114 : vector<8x128xf32>
    %116 = arith.addf %89, %93 : vector<8x128xf32>
    %117 = arith.mulf %116, %111 : vector<8x128xf32>
    %118 = arith.mulf %104, %117 : vector<8x128xf32>
    %c1_50 = arith.constant 1 : index
    %c0_51 = arith.constant 0 : index
    %c0_52 = arith.constant 0 : index
    %119 = vector.load %arg6[%c1_50, %c0_51, %c0_52] : memref<3x8x128xf32, #tpu.memory_space<vmem>>, vector<1x8x128xf32>
    %120 = vector.shape_cast %119 : vector<1x8x128xf32> to vector<8x128xf32>
    %121 = vector.shape_cast %104 : vector<8x128xf32> to vector<1x8x128xf32>
    tpu.vector_store %arg6[%c1_50, %c0_51, %c0_52], %121 {strides = array<i32>} : memref<3x8x128xf32, #tpu.memory_space<vmem>>, vector<1x8x128xf32>,
    %c1_53 = arith.constant 1 : index
    %c0_54 = arith.constant 0 : index
    %c0_55 = arith.constant 0 : index
    %122 = vector.load %arg7[%c1_53, %c0_54, %c0_55] : memref<3x8x128xf32, #tpu.memory_space<vmem>>, vector<1x8x128xf32>
    %123 = vector.shape_cast %122 : vector<1x8x128xf32> to vector<8x128xf32>
    %124 = vector.shape_cast %100 : vector<8x128xf32> to vector<1x8x128xf32>
    tpu.vector_store %arg7[%c1_53, %c0_54, %c0_55], %124 {strides = array<i32>} : memref<3x8x128xf32, #tpu.memory_space<vmem>>, vector<1x8x128xf32>,
    %c2 = arith.constant 2 : index
    %c0_56 = arith.constant 0 : index
    %c0_57 = arith.constant 0 : index
    %125 = vector.load %arg3[%c2, %c0_56, %c0_57] : memref<3x8x128xf32, #tpu.memory_space<vmem>>, vector<1x8x128xf32>
    %126 = vector.shape_cast %125 : vector<1x8x128xf32> to vector<8x128xf32>
    %c2_58 = arith.constant 2 : index
    %c0_59 = arith.constant 0 : index
    %c0_60 = arith.constant 0 : index
    %127 = vector.load %arg4[%c2_58, %c0_59, %c0_60] : memref<3x8x128xf32, #tpu.memory_space<vmem>>, vector<1x8x128xf32>
    %128 = vector.shape_cast %127 : vector<1x8x128xf32> to vector<8x128xf32>
    %cst_61 = arith.constant 0.000000e+00 : f32
    %129 = vector.broadcast %cst_61 : f32 to vector<8x128xf32>
    %130 = arith.cmpf ogt, %126, %129 : vector<8x128xf32>
    %cst_62 = arith.constant 3.14159274 : f32
    %131 = vector.broadcast %cst_62 : f32 to vector<8x128xf32>
    %132 = arith.mulf %126, %131 : vector<8x128xf32>
    %cst_63 = arith.constant 0.000000e+00 : f32
    %133 = vector.broadcast %cst_63 : f32 to vector<8x128xf32>
    %134 = arith.select %130, %132, %133 : vector<8x128xi1>, vector<8x128xf32>
    %cst_64 = arith.constant 5.000000e-01 : f32
    %135 = vector.broadcast %cst_64 : f32 to vector<8x128xf32>
    %136 = arith.mulf %135, %134 : vector<8x128xf32>
    %137 = arith.addf %136, %4 : vector<8x128xf32>
    %138 = arith.addf %137, %6 : vector<8x128xf32>
    %139 = math.cos %137 : vector<8x128xf32>
    %140 = math.sin %137 : vector<8x128xf32>
    %141 = math.cos %138 : vector<8x128xf32>
    %142 = math.sin %138 : vector<8x128xf32>
    %143 = arith.mulf %139, %139 : vector<8x128xf32>
    %144 = arith.mulf %143, %115 : vector<8x128xf32>
    %145 = arith.mulf %140, %140 : vector<8x128xf32>
    %146 = arith.mulf %145, %115 : vector<8x128xf32>
    %147 = arith.mulf %141, %141 : vector<8x128xf32>
    %148 = arith.mulf %147, %118 : vector<8x128xf32>
    %149 = arith.mulf %142, %142 : vector<8x128xf32>
    %150 = arith.mulf %149, %118 : vector<8x128xf32>
    %151 = arith.addf %144, %148 : vector<8x128xf32>
    %cst_65 = arith.constant 1.000000e+00 : f32
    %152 = vector.broadcast %cst_65 : f32 to vector<8x128xf32>
    %153 = arith.subf %152, %151 : vector<8x128xf32>
    %cst_66 = arith.constant 0.000000e+00 : f32
    %cst_67 = arith.constant 1.000000e+00 : f32
    %154 = vector.broadcast %cst_66 : f32 to vector<8x128xf32>
    %155 = arith.maximumf %154, %153 : vector<8x128xf32>
    %156 = vector.broadcast %cst_67 : f32 to vector<8x128xf32>
    %157 = arith.minimumf %156, %155 : vector<8x128xf32>
    %158 = arith.cmpf olt, %128, %157 : vector<8x128xf32>
    %cst_68 = arith.constant 1.000000e+00 : f32
    %cst_69 = arith.constant 0.000000e+00 : f32
    %159 = vector.broadcast %cst_68 : f32 to vector<8x128xf32>
    %160 = vector.broadcast %cst_69 : f32 to vector<8x128xf32>
    %161 = arith.select %158, %159, %160 : vector<8x128xi1>, vector<8x128xf32>
    %cst_70 = arith.constant 0.000000e+00 : f32
    %162 = vector.broadcast %cst_70 : f32 to vector<8x128xf32>
    %163 = arith.cmpf oeq, %161, %162 : vector<8x128xf32>
    %164 = arith.select %163, %151, %153 : vector<8x128xi1>, vector<8x128xf32>
    %cst_71 = arith.constant 9.99999996E-13 : f32
    %165 = vector.broadcast %cst_71 : f32 to vector<8x128xf32>
    %166 = arith.maximumf %164, %165 : vector<8x128xf32>
    %cst_72 = arith.constant 1.000000e+00 : f32
    %167 = vector.broadcast %cst_72 : f32 to vector<8x128xf32>
    %168 = arith.divf %167, %166 : vector<8x128xf32>
    %cst_73 = arith.constant 1.000000e+00 : f32
    %169 = vector.broadcast %cst_73 : f32 to vector<8x128xf32>
    %170 = arith.subf %169, %161 : vector<8x128xf32>
    %171 = arith.mulf %151, %168 : vector<8x128xf32>
    %172 = arith.mulf %170, %171 : vector<8x128xf32>
    %173 = arith.addf %146, %150 : vector<8x128xf32>
    %174 = arith.mulf %173, %168 : vector<8x128xf32>
    %175 = arith.mulf %161, %174 : vector<8x128xf32>
    %c2_74 = arith.constant 2 : index
    %c0_75 = arith.constant 0 : index
    %c0_76 = arith.constant 0 : index
    %176 = vector.load %arg6[%c2_74, %c0_75, %c0_76] : memref<3x8x128xf32, #tpu.memory_space<vmem>>, vector<1x8x128xf32>
    %177 = vector.shape_cast %176 : vector<1x8x128xf32> to vector<8x128xf32>
    %178 = vector.shape_cast %161 : vector<8x128xf32> to vector<1x8x128xf32>
    tpu.vector_store %arg6[%c2_74, %c0_75, %c0_76], %178 {strides = array<i32>} : memref<3x8x128xf32, #tpu.memory_space<vmem>>, vector<1x8x128xf32>,
    %c2_77 = arith.constant 2 : index
    %c0_78 = arith.constant 0 : index
    %c0_79 = arith.constant 0 : index
    %179 = vector.load %arg7[%c2_77, %c0_78, %c0_79] : memref<3x8x128xf32, #tpu.memory_space<vmem>>, vector<1x8x128xf32>
    %180 = vector.shape_cast %179 : vector<1x8x128xf32> to vector<8x128xf32>
    %181 = vector.shape_cast %157 : vector<8x128xf32> to vector<1x8x128xf32>
    tpu.vector_store %arg7[%c2_77, %c0_78, %c0_79], %181 {strides = array<i32>} : memref<3x8x128xf32, #tpu.memory_space<vmem>>, vector<1x8x128xf32>,
    %c0_80 = arith.constant 0 : index
    %c0_81 = arith.constant 0 : index
    %c0_82 = arith.constant 0 : index
    %182 = vector.load %arg9[%c0_80, %c0_81, %c0_82] : memref<2x8x128xf32, #tpu.memory_space<vmem>>, vector<1x8x128xf32>
    %183 = vector.shape_cast %182 : vector<1x8x128xf32> to vector<8x128xf32>
    %184 = vector.shape_cast %172 : vector<8x128xf32> to vector<1x8x128xf32>
    tpu.vector_store %arg9[%c0_80, %c0_81, %c0_82], %184 {strides = array<i32>} : memref<2x8x128xf32, #tpu.memory_space<vmem>>, vector<1x8x128xf32>,
    %c1_83 = arith.constant 1 : index
    %c0_84 = arith.constant 0 : index
    %c0_85 = arith.constant 0 : index
    %185 = vector.load %arg9[%c1_83, %c0_84, %c0_85] : memref<2x8x128xf32, #tpu.memory_space<vmem>>, vector<1x8x128xf32>
    %186 = vector.shape_cast %185 : vector<1x8x128xf32> to vector<8x128xf32>
    %187 = vector.shape_cast %175 : vector<8x128xf32> to vector<1x8x128xf32>
    tpu.vector_store %arg9[%c1_83, %c0_84, %c0_85], %187 {strides = array<i32>} : memref<2x8x128xf32, #tpu.memory_space<vmem>>, vector<1x8x128xf32>,
    %c0_i32_86 = arith.constant 0 : i32
    %188 = arith.cmpi eq, %arg1, %c0_i32_86 : i32
    %189 = arith.extui %188 : i1 to i32
    %c0_i32_87 = arith.constant 0 : i32
    %190 = arith.cmpi ne, %189, %c0_i32_87 : i32
    scf.if %190 {
      %c0_88 = arith.constant 0 : index
      %c0_89 = arith.constant 0 : index
      %c0_90 = arith.constant 0 : index
      %191 = vector.load %arg9[%c0_88, %c0_89, %c0_90] : memref<2x8x128xf32, #tpu.memory_space<vmem>>, vector<2x8x128xf32>
      %c0_91 = arith.constant 0 : index
      %c0_92 = arith.constant 0 : index
      %c0_93 = arith.constant 0 : index
      %192 = vector.load %arg8[%c0_91, %c0_92, %c0_93] : memref<2x8x128xf32, #tpu.memory_space<vmem>>, vector<2x8x128xf32>
      tpu.vector_store %arg8[%c0_91, %c0_92, %c0_93], %191 {strides = array<i32>} : memref<2x8x128xf32, #tpu.memory_space<vmem>>, vector<2x8x128xf32>,
    } else {
    }
    return
  }
  func.func @transform_0(%arg0: i32, %arg1: i32) -> i32 {
    %c0_i32 = arith.constant 0 : i32
    %c0_i32_0 = arith.constant 0 : i32
    return %c0_i32 : i32
  }
  func.func @transform_1(%arg0: i32, %arg1: i32) -> (i32, i32, i32) {
    %c0_i32 = arith.constant 0 : i32
    %c0_i32_0 = arith.constant 0 : i32
    return %arg1, %arg0, %c0_i32 : i32, i32, i32
  }
  func.func @transform_2(%arg0: i32, %arg1: i32) -> (i32, i32, i32) {
    %c0_i32 = arith.constant 0 : i32
    %c0_i32_0 = arith.constant 0 : i32
    return %arg1, %arg0, %c0_i32 : i32, i32, i32
  }
  func.func @transform_3(%arg0: i32, %arg1: i32) -> (i32, i32, i32) {
    %c0_i32 = arith.constant 0 : i32
    %c0_i32_0 = arith.constant 0 : i32
    %c0_i32_1 = arith.constant 0 : i32
    return %c0_i32, %arg0, %c0_i32_0 : i32, i32, i32
  }
  func.func @transform_4(%arg0: i32, %arg1: i32) -> (i32, i32, i32) {
    %c0_i32 = arith.constant 0 : i32
    %c0_i32_0 = arith.constant 0 : i32
    return %arg1, %arg0, %c0_i32 : i32, i32, i32
  }
  func.func @transform_5(%arg0: i32, %arg1: i32) -> (i32, i32, i32) {
    %c0_i32 = arith.constant 0 : i32
    %c0_i32_0 = arith.constant 0 : i32
    return %arg1, %arg0, %c0_i32 : i32, i32, i32
  }
  func.func @transform_6(%arg0: i32, %arg1: i32) -> (i32, i32, i32) {
    %c0_i32 = arith.constant 0 : i32
    %c0_i32_0 = arith.constant 0 : i32
    %c0_i32_1 = arith.constant 0 : i32
    return %c0_i32, %arg0, %c0_i32_0 : i32, i32, i32
  }
}

</mosaic_0001>

<bundles_post_ra>
// kernel: tpu_custom_call.1
= control target key start
LH: loop header
LB: loop body
LE: loop exit
PB: predicated region body
PF: predicated region fallthrough
CT: control target
= control target key end

     0   :  { %12 = vsyncpa [#allocation6], 0  ;;  %s2497_s0 = inlined_call_operand.hbm [shape: f32[2], index: 0, kind: input, shape index: {}]   ;;  %s2498_s1 = inlined_call_operand.hbm [shape: f32[3,8,128], index: 1, kind: input, shape index: {}]   ;;  %s2499_s2 = inlined_call_operand.hbm [shape: f32[3,8,128], index: 2, kind: input, shape index: {}]   ;;  %s2500_s3 = inlined_call_operand.hbm [shape: f32[2,8,128], index: 3, kind: input, shape index: {}]   ;;  %s2501_s4 = inlined_call_operand.hbm [shape: f32[3,8,128], index: 4, kind: output, shape index: {0}]   ;;  %s2502_s5 = inlined_call_operand.hbm [shape: f32[3,8,128], index: 5, kind: output, shape index: {1}]   ;;  %s2503_s6 = inlined_call_operand.hbm [shape: f32[2,8,128], index: 6, kind: output, shape index: {2}]  }
   0x1   :  { %13 = vsyncpa [#allocation4], 0 }
   0x2   :  { %14 = vsyncpa [#allocation9], 0 }
   0x3   :  { %15 = vsyncpa [#allocation5], 0 }
   0x4   :  { %16 = vsyncpa [#allocation13], 0  ;;  %s1760_s21 = smov [#allocation8]   ;;  %s1761_s23 = smov [#allocation7]  }
   0x5   :  { %s42_s22 = sshll.u32 %s1760_s21, 4  ;;  %s30_s24 = sshll.u32 %s1761_s23, 4  ;;  %s43_s22 = int_to_ptr.vmem [resolvable:$true] %s42_s22  ;;  %s31_s24 = int_to_ptr.vmem [resolvable:$true] %s30_s24 }
   0x6   :  { %s1630_s25 = scalar_lea.vmem %s43_s22, 384  ;;  %p1635_p1 = scmp.lt.s32.totalorder %s43_s22, %s43_s22 }
   0x7   :  { %p1631_p0 = scmp.ne.s32.totalorder %s43_s22, %s1630_s25  ;;  %p1636_p2 = scmp.lt.s32.totalorder %s1630_s25, %s1630_s25 }
   0x9   :  { %p1637_p3 = por %p1636_p2, %p1635_p1 }
   0xb   :  { %p1638_p4 = pnand %p1637_p3, %p1631_p0 }
   0xd   :  { %1641 = shalt.err (!%p1638_p4)
}
   0xe   :  { %s1762_s26 = smov 128   ;;  %s1763_s27 = smov 8  }
   0xf   :  { %48 = dma.hbm_to_vmem [thread:$0]  %s2499_s2, 384, %s43_s22, [#allocation9], %s1762_s26, %s1762_s26, %s1763_s27  }
  0x10   :  { %s1764_s30 = smov [#allocation3]   ;;  %s1658_s9 = scalar_lea.vmem %s31_s24, 384 }
  0x11   :  { %24 = dma.hbm_to_smem %s2497_s0, 16, %s1764_s30, [#allocation6]  }
  0x12   :  { %p1659_p5 = scmp.ne.s32.totalorder %s31_s24, %s1658_s9  ;;  %p1663_p6 = scmp.lt.s32.totalorder %s31_s24, %s31_s24 }
  0x13   :  { %p1664_p7 = scmp.lt.s32.totalorder %s1658_s9, %s1658_s9 }
  0x15   :  { %p1665_p8 = por %p1664_p7, %p1663_p6 }
  0x17   :  { %p1666_p9 = pnand %p1665_p8, %p1659_p5 }
  0x19   :  { %1669 = shalt.err (!%p1666_p9)
}
  0x1a   :  { %36 = dma.hbm_to_vmem [thread:$0]  %s2498_s1, 384, %s31_s24, [#allocation4], %s1762_s26, %s1762_s26, %s1763_s27  }
  0x1b   :  { %s1765_s2 = smov [#allocation10]  }
  0x1c   :  { %s54_s12 = sshll.u32 %s1765_s2, 4  ;;  %s55_s12 = int_to_ptr.vmem [resolvable:$true] %s54_s12 }
  0x1d   :  { %s1678_s13 = scalar_lea.vmem %s55_s12, 256  ;;  %p1683_p11 = scmp.lt.s32.totalorder %s55_s12, %s55_s12 }
  0x1e   :  { %p1679_p10 = scmp.ne.s32.totalorder %s55_s12, %s1678_s13  ;;  %p1684_p12 = scmp.lt.s32.totalorder %s1678_s13, %s1678_s13 }
  0x20   :  { %p1685_p13 = por %p1684_p12, %p1683_p11 }
  0x22   :  { %p1686_p0 = pnand %p1685_p13, %p1679_p10 }
  0x24   :  { %1689 = shalt.err (!%p1686_p0)
}
  0x25   :  { %60 = dma.hbm_to_vmem [thread:$0]  %s2500_s3, 256, %s55_s12, [#allocation9], %s1762_s26, %s1762_s26, %s1763_s27  }
  0x26   :  { %1750 = dma.done.wait [#allocation6], 16  }
  0x27   :  { %1751 = vsyncadd [#allocation6], 4294967280 }
  0x28   :  { %1752 = dma.done.wait [#allocation4], 384  }
  0x29   :  { %1753 = vsyncadd [#allocation4], 4294966912 }
  0x2a   :  { %1754 = dma.done.wait [#allocation9], 640  }
  0x2b   :  { %1755 = vsyncadd [#allocation9], 4294966656 }
  0x2c   :  { %73 = sfence }
  0x2d   :  { %s82_s1 = sld [smem:[#allocation3]]  ;;  %v89_v0 = vld [vmem:[#allocation7] sm:$0xff]  ;;  %v539_v3 = vld [vmem:[#allocation7 + $0x8] sm:$0xff]  ;;  %v1766_v36 = vmov 683565275   ;;  %s1773_s3 = smov [#allocation12]  }
  0x2e   :  { %s1503_s15 = sld [smem:[#allocation3 + $0x1]]  ;;  %vm91_vm0 = vcmp.gt.f32.partialorder %v89_v0, 0.0  ;;  %v92_v1 = vmul.f32 3.1415927, %v89_v0  ;;  %vm542_vm1 = vcmp.gt.f32.partialorder %v539_v3, 0.0  ;;  %s1470_s16 = sshll.u32 %s1773_s3, 4  ;;  %s1471_s16 = int_to_ptr.vmem [resolvable:$true] %s1470_s16 }
  0x2f   :  { %v543_v5 = vmul.f32 3.1415927, %v539_v3  ;;  %v1767_v38 = vmov 2475754826   ;;  %v1768_v40 = vmov 2131351028   ;;  %p1695_p2 = scmp.lt.s32.totalorder %s1471_s16, %s1471_s16 }
  0x30   :  { %v93_v2 = vsel %vm91_vm0, %v92_v1, 0.0  ;;  %v1769_v42 = vmov 2102212464   ;;  %v1770_v44 = vmov 920167782   ;;  %s1774_s17 = smov [#allocation11]  }
  0x31   :  { %v94_v4 = vmul.f32 0.5, %v93_v2  ;;  %v544_v7 = vsel %vm542_vm1, %v543_v5, 0.0  ;;  %v1771_v51 = vmov 1326507024   ;;  %s1458_s18 = sshll.u32 %s1774_s17, 4  ;;  %s1690_s19 = scalar_lea.vmem %s1471_s16, 384  ;;  %s1459_s18 = int_to_ptr.vmem [resolvable:$true] %s1458_s18 }
  0x32   :  { %v545_v10 = vmul.f32 0.5, %v544_v7  ;;  %p1691_p1 = scmp.ne.s32.totalorder %s1471_s16, %s1690_s19  ;;  %p1696_p3 = scmp.lt.s32.totalorder %s1690_s19, %s1690_s19 }
  0x33   :  { %v1832_v6 = vstv %s82_s1 }
  0x34   :  { %v1834_v8 = vstv %s1503_s15  ;;  %v1837_v9 = vadd.f32 %v94_v4, %v1832_v6  ;;  %v1850_v18 = vadd.f32 %v545_v10, %v1832_v6  ;;  %p1697_p4 = por %p1696_p3, %p1695_p2 }
  0x36   :  { %v1841_v11 = vadd.f32 %v1837_v9, %v1834_v8  ;;  %v97_v12 = vand.u32 2147483647, %v1837_v9  ;;  %v100_v13 = vand.u32 2139095040, %v1837_v9  ;;  %v551_v22 = vand.u32 2139095040, %v1850_v18  ;;  %p1698_p5 = pnand %p1697_p4, %p1691_p1 }
  0x38   :  { %v101_v14 = vshrl.u32 %v100_v13, 23  ;;  %v104_v15 = vand.u32 8388607, %v97_v12  ;;  %v304_v16 = vand.u32 2147483647, %v1841_v11  ;;  %v307_v17 = vand.u32 2139095040, %v1841_v11 }
  0x39   :  { %v552_v27 = vshrl.u32 %v551_v22, 23 }
  0x3a   :  { %v1504_v19 = vadd.s32 4294967169, %v101_v14  ;;  %v308_v20 = vshrl.u32 %v307_v17, 23  ;;  %v311_v21 = vand.u32 8388607, %v304_v16  ;;  %v105_v24 = vor.u32 8388608, %v104_v15 }
  0x3b   :  { %v1859_v34 = vadd.s32 4294967169, %v552_v27 }
  0x3c   :  { %v107_v23 = vadd.s32 1, %v1504_v19  ;;  %v1512_v25 = vadd.s32 4294967169, %v308_v20  ;;  %v312_v26 = vor.u32 8388608, %v311_v21  ;;  %v1855_v32 = vshll.u32 %v105_v24, 8 }
  0x3e   :  { %vm108_vm2 = vcmp.gt.s32.totalorder %v107_v23, 0  ;;  %v314_v29 = vadd.s32 1, %v1512_v25  ;;  %v1857_v33 = vshll.u32 %v312_v26, 8 }
  0x3f   :  { %v109_v28 = vsel %vm108_vm2, %v107_v23, 0 }
  0x40   :  { %v110_v30 = vshrl.u32 %v109_v28, 5  ;;  %v111_v31 = vand.u32 31, %v109_v28  ;;  %vm315_vm3 = vcmp.gt.s32.totalorder %v314_v29, 0 }
  0x41   :  { %v316_v56 = vsel %vm315_vm3, %v314_v29, 0 }
  0x42   :  { %v112_v35 = vsub.s32 32, %v111_v31  ;;  %v114_v37 = vshll.u32 %v1766_v36, %v111_v31  ;;  %v117_v39 = vshll.u32 %v1767_v38, %v111_v31  ;;  %v120_v41 = vshll.u32 %v1768_v40, %v111_v31 }
  0x43   :  { %v123_v43 = vshll.u32 %v1769_v42, %v111_v31  ;;  %v126_v45 = vshll.u32 %v1770_v44, %v111_v31  ;;  %vm129_vm4 = vcmp.lt.s32.totalorder %v110_v30, 1  ;;  %vm130_vm5 = vcmp.lt.s32.totalorder %v110_v30, 2 }
  0x44   :  { %v113_v46 = vshrl.u32 %v1766_v36, %v112_v35  ;;  %v115_v47 = vshrl.u32 %v1767_v38, %v112_v35  ;;  %v118_v48 = vshrl.u32 %v1768_v40, %v112_v35  ;;  %v121_v49 = vshrl.u32 %v1769_v42, %v112_v35 }
  0x45   :  { %v124_v50 = vshrl.u32 %v1770_v44, %v112_v35  ;;  %v127_v52 = vshrl.u32 %v1771_v51, %v112_v35  ;;  %vm131_vm6 = vcmp.lt.s32.totalorder %v110_v30, 3  ;;  %vm132_vm7 = vcmp.lt.s32.totalorder %v110_v30, 4 }
  0x46   :  { %v116_v53 = vor.u32 %v115_v47, %v114_v37  ;;  %v119_v54 = vor.u32 %v118_v48, %v117_v39  ;;  %v122_v55 = vor.u32 %v121_v49, %v120_v41  ;;  %v317_v59 = vshrl.u32 %v316_v56, 5 }
  0x47   :  { %v125_v57 = vor.u32 %v124_v50, %v123_v43  ;;  %v128_v58 = vor.u32 %v127_v52, %v126_v45  ;;  %v318_v60 = vand.u32 31, %v316_v56  ;;  %v558_v43 = vadd.s32 1, %v1859_v34 }
  0x48   :  { %v133_v61 = vsel %vm129_vm4, %v113_v46, %v116_v53  ;;  %v134_v62 = vsel %vm132_vm7, %v122_v55, 2102212464  ;;  %v137_v63 = vsel %vm129_vm4, %v116_v53, %v119_v54  ;;  %v141_v0 = vsel %vm129_vm4, %v119_v54, %v122_v55 }
  0x49   :  { %v135_v1 = vsel %vm131_vm6, %v119_v54, %v134_v62  ;;  %v138_v2 = vsel %vm132_vm7, %v125_v57, 920167782  ;;  %v142_v3 = vsel %vm132_vm7, %v128_v58, 1326507024  ;;  %v319_v4 = vsub.s32 32, %v318_v60 }
  0x4a   :  { %v136_v5 = vsel %vm130_vm5, %v133_v61, %v135_v1  ;;  %v139_v7 = vsel %vm131_vm6, %v122_v55, %v138_v2  ;;  %v143_v10 = vsel %vm131_vm6, %v125_v57, %v142_v3  ;;  %v321_v13 = vshll.u32 %v1766_v36, %v318_v60  ;;  %v992_v61 = vld [vmem:[#allocation7 + $0x10] sm:$0xff] }
  0x4b   :  { %v140_v14 = vsel %vm130_vm5, %v137_v63, %v139_v7  ;;  %v144_v15 = vsel %vm130_vm5, %v141_v0, %v143_v10  ;;  %v152_v17 = vmul.u32 %v1855_v32, %v136_v5  ;;  %v320_v19 = vshrl.u32 %v1766_v36, %v319_v4 }
  0x4c   :  { %v1886_v20 = vmul.u32.u64.low %v1855_v32, %v144_v15  ;;  %v1887_v21 = vmul.u32.u64.high %v1855_v32, %v144_v15, %v1886_v20  ;;  %v1890_v22 = vmul.u32.u64.low %v1855_v32, %v140_v14  ;;  %v1891_v23 = vmul.u32.u64.high %v1855_v32, %v140_v14, %v1890_v22 }
  0x4d   :  { %v322_v24 = vshrl.u32 %v1767_v38, %v319_v4  ;;  %v324_v25 = vshll.u32 %v1767_v38, %v318_v60  ;;  %v325_v26 = vshrl.u32 %v1768_v40, %v319_v4  ;;  %v327_v27 = vshll.u32 %v1768_v40, %v318_v60 }
  0x4e   :  { %v328_v28 = vshrl.u32 %v1769_v42, %v319_v4  ;;  %v330_v29 = vshll.u32 %v1769_v42, %v318_v60  ;;  %v331_v30 = vshrl.u32 %v1770_v44, %v319_v4  ;;  %v333_v31 = vshll.u32 %v1770_v44, %v318_v60 }
  0x4f   :  { %v323_v35 = vor.u32 %v322_v24, %v321_v13  ;;  %v326_v32 = vor.u32 %v325_v26, %v324_v25  ;;  %v334_v37 = vshrl.u32 %v1771_v51, %v319_v4  ;;  %vm336_vm8 = vcmp.lt.s32.totalorder %v317_v59, 1 }
  0x50   :  { %vm154_vm9 = vc.u32 %v1887_v21, %v1890_v22  ;;  %v155_v39 = vadd.s32 1, %v1891_v23  ;;  %v329_v41 = vor.u32 %v328_v28, %v327_v27  ;;  %v332_v45 = vor.u32 %v331_v30, %v330_v29 }
  0x51   :  { %v335_v46 = vor.u32 %v334_v37, %v333_v31  ;;  %vm337_vm10 = vcmp.lt.s32.totalorder %v317_v59, 2  ;;  %vm338_vm11 = vcmp.lt.s32.totalorder %v317_v59, 3  ;;  %vm339_vm12 = vcmp.lt.s32.totalorder %v317_v59, 4 }
  0x52   :  { %v156_v47 = vsel %vm154_vm9, %v155_v39, %v1891_v23  ;;  %v340_v48 = vsel %vm336_vm8, %v320_v19, %v323_v35  ;;  %v344_v49 = vsel %vm336_vm8, %v323_v35, %v326_v32  ;;  %v341_v52 = vsel %vm339_vm12, %v329_v41, 2102212464 }
  0x53   :  { %v157_v50 = vadd.s32 %v156_v47, %v152_v17  ;;  %v345_v53 = vsel %vm339_vm12, %v332_v45, 920167782  ;;  %v348_v54 = vsel %vm336_vm8, %v326_v32, %v329_v41  ;;  %v342_v55 = vsel %vm338_vm11, %v326_v32, %v341_v52 }
  0x54   :  { %v346_v56 = vsel %vm338_vm11, %v329_v41, %v345_v53  ;;  %v349_v57 = vsel %vm339_vm12, %v335_v46, 1326507024  ;;  %vm559_vm13 = vcmp.gt.s32.totalorder %v558_v43, 0  ;;  %v343_v62 = vsel %vm337_vm10, %v340_v48, %v342_v55 }
  0x55   :  { %v158_v34 = vadd.s32 536870912, %v157_v50  ;;  %v347_v58 = vsel %vm337_vm10, %v344_v49, %v346_v56  ;;  %v350_v60 = vsel %vm338_vm11, %v332_v45, %v349_v57  ;;  %v560_v5 = vsel %vm559_vm13, %v558_v43, 0 }
  0x56   :  { %v351_v63 = vsel %vm337_vm10, %v348_v54, %v350_v60  ;;  %v1915_v0 = vmul.u32.u64.low %v1857_v33, %v347_v58  ;;  %v1916_v1 = vmul.u32.u64.high %v1857_v33, %v347_v58, %v1915_v0  ;;  %v562_v7 = vand.u32 31, %v560_v5 }
  0x57   :  { %v1919_v2 = vshrl.u32 %v158_v34, 30  ;;  %v1922_v3 = vmul.u32.u64.low %v1857_v33, %v351_v63  ;;  %v1923_v4 = vmul.u32.u64.high %v1857_v33, %v351_v63, %v1922_v3  ;;  %v996_v10 = vmul.f32 3.1415927, %v992_v61 }
  0x58   :  { %v359_v14 = vmul.u32 %v1857_v33, %v343_v62  ;;  %vm995_vm14 = vcmp.gt.f32.partialorder %v992_v61, 0.0  ;;  %v362_v59 = vadd.s32 1, %v1916_v1  ;;  %v548_v17 = vand.u32 2147483647, %v1850_v18 }
  0x59   :  { %v160_v13 = vshll.u32 %v1919_v2, 30  ;;  %vm361_vm15 = vc.u32 %v1923_v4, %v1915_v0  ;;  %v563_v20 = vsub.s32 32, %v562_v7  ;;  %v997_v23 = vsel %vm995_vm14, %v996_v10, 0.0 }
  0x5a   :  { %v363_v19 = vsel %vm361_vm15, %v362_v59, %v1916_v1  ;;  %v555_v27 = vand.u32 8388607, %v548_v17  ;;  %v1934_v33 = vmul.f32 0.5, %v997_v23  ;;  %v565_v29 = vshll.u32 %v1766_v36, %v562_v7 }
  0x5b   :  { %v161_v15 = vsub.s32 %v157_v50, %v160_v13  ;;  %v364_v25 = vadd.s32 %v363_v19, %v359_v14  ;;  %v566_v30 = vshrl.u32 %v1767_v38, %v563_v20  ;;  %v568_v31 = vshll.u32 %v1767_v38, %v562_v7 }
  0x5c   :  { %v569_v32 = vshrl.u32 %v1768_v40, %v563_v20  ;;  %v571_v37 = vshll.u32 %v1768_v40, %v562_v7  ;;  %v572_v39 = vshrl.u32 %v1769_v42, %v563_v20  ;;  %v561_v43 = vshrl.u32 %v560_v5, 5 }
  0x5d   :  { %v163_v24 = vsub.s32 0, %v161_v15  ;;  %v365_v28 = vadd.s32 536870912, %v364_v25  ;;  %v574_v45 = vshll.u32 %v1769_v42, %v562_v7  ;;  %v575_v46 = vshrl.u32 %v1770_v44, %v563_v20 }
  0x5e   :  { %v153_v47 = vadd.s32 %v1890_v22, %v1887_v21  ;;  %v1950_v49 = vadd.f32 %v1850_v18, %v1834_v8  ;;  %v556_v50 = vor.u32 8388608, %v555_v27  ;;  %v564_v53 = vshrl.u32 %v1766_v36, %v563_v20 }
  0x5f   :  { %v1505_v26 = vmin.u32 %v163_v24, %v161_v15  ;;  %v1942_v41 = vshrl.u32 %v365_v28, 30  ;;  %v577_v54 = vshll.u32 %v1770_v44, %v562_v7  ;;  %v578_v55 = vshrl.u32 %v1771_v51, %v563_v20 }
  0x60   :  { %v567_v56 = vor.u32 %v566_v30, %v565_v29  ;;  %v570_v57 = vor.u32 %v569_v32, %v568_v31  ;;  %v573_v34 = vor.u32 %v572_v39, %v571_v37  ;;  %v576_v22 = vor.u32 %v575_v46, %v574_v45 }
  0x61   :  { %v165_v35 = vclz %v1505_v26  ;;  %v367_v52 = vshll.u32 %v1942_v41, 30  ;;  %vm583_vm1 = vcmp.lt.s32.totalorder %v561_v43, 4  ;;  %v579_v3 = vor.u32 %v578_v55, %v577_v54 }
  0x62   :  { %v585_v63 = vsel %vm583_vm1, %v573_v34, 2102212464  ;;  %vm580_vm2 = vcmp.lt.s32.totalorder %v561_v43, 1  ;;  %v596_v5 = vshll.u32 %v556_v50, 8  ;;  %vm582_vm3 = vcmp.lt.s32.totalorder %v561_v43, 3 }
  0x63   :  { %v1506_v48 = vadd.s32 4294967294, %v165_v35  ;;  %v1956_v21 = vsub.s32 %v364_v25, %v367_v52  ;;  %v758_v13 = vand.u32 2139095040, %v1950_v49  ;;  %vm99_vm4 = vcmp.lt.s32.totalorder %v1837_v9, 0 }
  0x64   :  { %vm581_vm5 = vcmp.lt.s32.totalorder %v561_v43, 2  ;;  %v584_v59 = vsel %vm580_vm2, %v564_v53, %v567_v56  ;;  %v588_v23 = vsel %vm580_vm2, %v567_v56, %v570_v57  ;;  %v589_v24 = vsel %vm583_vm1, %v576_v22, 920167782 }
  0x65   :  { %vm1507_vm0 = vcmp.lt.s32.totalorder %v1506_v48, 0  ;;  %v370_v1 = vsub.s32 0, %v1956_v21  ;;  %v590_v26 = vsel %vm582_vm3, %v573_v34, %v589_v24  ;;  %v592_v27 = vsel %vm580_vm2, %v570_v57, %v573_v34 }
  0x66   :  { %v168_v58 = vsel %vm1507_vm0, 0, %v1506_v48  ;;  %v593_v28 = vsel %vm583_vm1, %v579_v3, 1326507024  ;;  %v183_v31 = vsub.s32 4, %v1919_v2  ;;  %v759_v35 = vshrl.u32 %v758_v13, 23 }
  0x67   :  { %v169_v60 = vsub.s32 32, %v168_v58  ;;  %v170_v61 = vshll.u32 %v161_v15, %v168_v58  ;;  %v173_v62 = vsub.s32 4294967266, %v168_v58  ;;  %v1513_v14 = vmin.u32 %v370_v1, %v1956_v21 }
  0x68   :  { %v586_v15 = vsel %vm582_vm3, %v570_v57, %v585_v63  ;;  %v591_v39 = vsel %vm581_vm5, %v588_v23, %v590_v26  ;;  %v594_v45 = vsel %vm582_vm3, %v576_v22, %v593_v28  ;;  %v360_v52 = vadd.s32 %v1915_v0, %v1923_v4 }
  0x69   :  { %v171_v7 = vshrl.u32 %v153_v47, %v169_v60  ;;  %v174_v10 = vadd.s32 127, %v173_v62  ;;  %v372_v25 = vclz %v1513_v14  ;;  %v587_v37 = vsel %vm581_vm5, %v584_v59, %v586_v15 }
  0x6a   :  { %v595_v47 = vsel %vm581_vm5, %v592_v27, %v594_v45  ;;  %v1975_v48 = vmul.u32.u64.low %v596_v5, %v591_v39  ;;  %v1976_v50 = vmul.u32.u64.high %v596_v5, %v591_v39, %v1975_v48  ;;  %v755_v57 = vand.u32 2147483647, %v1950_v49 }
  0x6b   :  { %v172_v19 = vor.u32 %v171_v7, %v170_v61  ;;  %v175_v20 = vshll.u32 %v174_v10, 23  ;;  %v1514_v32 = vadd.s32 4294967294, %v372_v25  ;;  %v1528_v34 = vadd.s32 4294967169, %v759_v35 }
  0x6c   :  { %v1981_v53 = vmul.u32.u64.low %v596_v5, %v595_v47  ;;  %v1982_v54 = vmul.u32.u64.high %v596_v5, %v595_v47, %v1981_v53  ;;  %v603_v60 = vmul.u32 %v596_v5, %v587_v37  ;;  %vm1988_vm7 = vcmp.le.f32.partialorder %v97_v12, 0.7853982 }
  0x6d   :  { %v176_v29 = vor.u32 4788187, %v175_v20  ;;  %v179_v30 = vcvt.s32.f32 %v172_v19  ;;  %vm1515_vm6 = vcmp.lt.s32.totalorder %v1514_v32, 0  ;;  %v606_v4 = vadd.s32 1, %v1976_v50 }
  0x6e   :  { %v375_v56 = vsel %vm1515_vm6, 0, %v1514_v32  ;;  %v765_v62 = vadd.s32 1, %v1528_v34  ;;  %v184_v63 = vsel %vm99_vm4, %v183_v31, %v1919_v2  ;;  %vm605_vm8 = vc.u32 %v1982_v54, %v1975_v48 }
  0x6f   :  { %v177_v46 = vand.u32 2147483647, %v176_v29  ;;  %v376_v58 = vsub.s32 32, %v375_v56  ;;  %v377_v43 = vshll.u32 %v1956_v21, %v375_v56  ;;  %v380_v22 = vsub.s32 4294967266, %v375_v56 }
  0x70   :  { %v607_v12 = vsel %vm605_vm8, %v606_v4, %v1976_v50  ;;  %v2003_v5 = vand.u32 8388607, %v755_v57  ;;  %vm766_vm9 = vcmp.gt.s32.totalorder %v765_v62, 0  ;;  %v186_v14 = vsel %vm1988_vm7, 0, %v184_v63 }
  0x71   :  { %v180_v55 = vmul.f32 %v179_v30, %v177_v46  ;;  %v378_v1 = vshrl.u32 %v360_v52, %v376_v58  ;;  %v381_v3 = vadd.s32 127, %v380_v22  ;;  %v608_v13 = vadd.s32 %v607_v12, %v603_v60 }
  0x72   :  { %v390_v59 = vsub.s32 4, %v1942_v41  ;;  %v767_v15 = vsel %vm766_vm9, %v765_v62, 0  ;;  %vm306_vm10 = vcmp.lt.s32.totalorder %v1841_v11, 0  ;;  %vm2014_vm11 = vcmp.le.f32.partialorder %v304_v16, 0.7853982 }
  0x73   :  { %v181_v0 = vxor.u32 2147483648, %v180_v55  ;;  %v379_v2 = vor.u32 %v378_v1, %v377_v43  ;;  %v382_v10 = vshll.u32 %v381_v3, 23  ;;  %v609_v23 = vadd.s32 536870912, %v608_v13 }
  0x74   :  { %v769_v24 = vand.u32 31, %v767_v15  ;;  %v763_v28 = vor.u32 8388608, %v2003_v5  ;;  %v2021_v29 = vand.u32 3, %v186_v14  ;;  %v391_v30 = vsel %vm306_vm10, %v390_v59, %v1942_v41 }
  0x75   :  { %v182_v21 = vsel %vm99_vm4, %v181_v0, %v180_v55  ;;  %v383_v19 = vor.u32 4788187, %v382_v10  ;;  %v386_v20 = vcvt.s32.f32 %v379_v2  ;;  %v2018_v27 = vshrl.u32 %v609_v23, 30 }
  0x76   :  { %v185_v7 = vsel %vm1988_vm7, %v1837_v9, %v182_v21  ;;  %v770_v31 = vsub.s32 32, %v769_v24  ;;  %v2028_v35 = vadd.f32 %v1934_v33, %v1832_v6  ;;  %v772_v37 = vshll.u32 %v1766_v36, %v769_v24 }
  0x77   :  { %1592 = vcosq.f32 %v185_v7  ;;  %v384_v26 = vand.u32 2147483647, %v383_v19  ;;  %v611_v32 = vshll.u32 %v2018_v27, 30  ;;  %v775_v39 = vshll.u32 %v1767_v38, %v769_v24 }
  0x78   :  { %1594 = vsinq.f32 %v185_v7  ;;  %v773_v45 = vshrl.u32 %v1767_v38, %v770_v31  ;;  %v776_v46 = vshrl.u32 %v1768_v40, %v770_v31  ;;  %v778_v47 = vshll.u32 %v1768_v40, %v769_v24 }
  0x79   :  { %v387_v16 = vmul.f32 %v386_v20, %v384_v26  ;;  %v781_v41 = vshll.u32 %v1769_v42, %v769_v24  ;;  %v2037_v52 = vsub.s32 %v608_v13, %v611_v32  ;;  %v779_v6 = vshrl.u32 %v1769_v42, %v770_v31 }
  0x7a   :  { %v782_v33 = vshrl.u32 %v1770_v44, %v770_v31  ;;  %vm192_vm12 = vcmp.eq.s32.totalorder %v2021_v29, 0  ;;  %vm195_vm13 = vcmp.eq.s32.totalorder %v2021_v29, 2  ;;  %v293_v53 = vadd.s32 3, %v186_v14 }
  0x7b   :  { %v388_v50 = vxor.u32 2147483648, %v387_v16  ;;  %v2043_v55 = vshrl.u32 %v767_v15, 5  ;;  %vm191_vm14 = vcmp.lt.s32.totalorder %v2021_v29, 2  ;;  %v393_v34 = vsel %vm2014_vm11, 0, %v391_v30 }
  0x7c   :  { %v614_v58 = vsub.s32 0, %v2037_v52  ;;  %v774_v43 = vor.u32 %v773_v45, %v772_v37  ;;  %v783_v60 = vor.u32 %v782_v33, %v781_v41  ;;  %v784_v61 = vshll.u32 %v1770_v44, %v769_v24 }
  0x7d   :  { %v389_v56 = vsel %vm306_vm10, %v388_v50, %v387_v16  ;;  %v785_v0 = vshrl.u32 %v1771_v51, %v770_v31  ;;  %v777_v62 = vor.u32 %v776_v46, %v775_v39  ;;  %v780_v63 = vor.u32 %v779_v6, %v778_v47 }
  0x7e   :  { %v392_v22 = vsel %vm2014_vm11, %v1841_v11, %v389_v56  ;;  %v1521_v4 = vmin.u32 %v614_v58, %v2037_v52  ;;  %v2057_v1 = vand.u32 3, %v393_v34  ;;  %v2059_v3 = vand.u32 3, %v293_v53 }
  0x7f   :  { %1596 = vcosq.f32 %v392_v22  ;;  %vm787_vm15 = vcmp.lt.s32.totalorder %v2043_v55, 1  ;;  %vm189_vm0 = vweird.f32 %v1837_v9  ;;  %v771_v5 = vshrl.u32 %v1766_v36, %v770_v31 }
  0x80   :  { %1598 = vsinq.f32 %v392_v22  ;;  %v616_v12 = vclz %v1521_v4  ;;  %vm789_vm1 = vcmp.lt.s32.totalorder %v2043_v55, 3  ;;  %vm790_vm2 = vcmp.lt.s32.totalorder %v2043_v55, 4 }
  0x81   :  { %v786_v10 = vor.u32 %v785_v0, %v784_v61  ;;  %vm788_vm3 = vcmp.lt.s32.totalorder %v2043_v55, 2  ;;  %v796_v13 = vsel %vm790_vm2, %v783_v60, 920167782  ;;  %v795_v15 = vsel %vm787_vm15, %v774_v43, %v777_v62 }
  0x82   :  { %v1522_v59 = vadd.s32 4294967294, %v616_v12  ;;  %v797_v19 = vsel %vm789_vm1, %v780_v63, %v796_v13  ;;  %v500_v20 = vadd.s32 3, %v393_v34  ;;  %v792_v23 = vsel %vm790_vm2, %v780_v63, 2102212464 }
  0x83   :  { %v803_v24 = vshll.u32 %v763_v28, 8  ;;  %v1004_v25 = vand.u32 2139095040, %v2028_v35  ;;  %v604_v31 = vadd.s32 %v1975_v48, %v1982_v54  ;;  %v798_v28 = vsel %vm788_vm3, %v795_v15, %v797_v19 }
  0x84   :  { %v2062_v21 = vpop.eup %1592  ;;  %vm1523_vm4 = vcmp.lt.s32.totalorder %v1522_v59, 0  ;;  %v799_v32 = vsel %vm787_vm15, %v777_v62, %v780_v63  ;;  %v800_v37 = vsel %vm790_vm2, %v786_v10, 1326507024  ;;  %vm396_vm5 = vweird.f32 %v1841_v11 }
  0x85   :  { %v2068_v7 = vpop.eup %1594  ;;  %v196_v2 = vxor.u32 2147483648, %v2062_v21  ;;  %v619_v16 = vsel %vm1523_vm4, 0, %v1522_v59  ;;  %v791_v46 = vsel %vm787_vm15, %v771_v5, %v774_v43  ;;  %v793_v48 = vsel %vm789_vm1, %v777_v62, %v792_v23 }
  0x86   :  { %v193_v14 = vxor.u32 2147483648, %v2068_v7  ;;  %v620_v39 = vsub.s32 32, %v619_v16  ;;  %v621_v45 = vshll.u32 %v2037_v52, %v619_v16  ;;  %vm296_vm6 = vcmp.eq.s32.totalorder %v2059_v3, 0 }
  0x87   :  { %v197_v30 = vsel %vm195_vm13, %v196_v2, %v2068_v7  ;;  %v624_v47 = vsub.s32 4294967266, %v619_v16  ;;  %v801_v41 = vsel %vm789_vm1, %v783_v60, %v800_v37  ;;  %v1005_v50 = vshrl.u32 %v1004_v25, 23  ;;  %v2143_v25 = vld [vmem:[#allocation10] sm:$0xff] }
  0x88   :  { %v194_v26 = vsel %vm192_vm12, %v2062_v21, %v193_v14  ;;  %vm550_vm7 = vcmp.lt.s32.totalorder %v1850_v18, 0  ;;  %v622_v6 = vshrl.u32 %v604_v31, %v620_v39  ;;  %v802_v52 = vsel %vm788_vm3, %v799_v32, %v801_v41 }
  0x89   :  { %v198_v54 = vsel %vm191_vm14, %v194_v26, %v197_v30  ;;  %v2114_v33 = vmul.u32.u64.low %v803_v24, %v798_v28  ;;  %v2115_v53 = vmul.u32.u64.high %v803_v24, %v798_v28, %v2114_v33  ;;  %vm398_vm8 = vcmp.lt.s32.totalorder %v2057_v1, 2  ;;  %v2152_v28 = vld [vmem:[#allocation10 + $0x8] sm:$0xff] }
  0x8a   :  { %vm299_vm9 = vcmp.eq.s32.totalorder %v2059_v3, 2  ;;  %v625_v29 = vadd.s32 127, %v624_v47  ;;  %v794_v56 = vsel %vm788_vm3, %v791_v46, %v793_v48  ;;  %vm399_vm10 = vcmp.eq.s32.totalorder %v2057_v1, 0 }
  0x8b   :  { %vm295_vm11 = vcmp.lt.s32.totalorder %v2059_v3, 2  ;;  %v623_v34 = vor.u32 %v622_v6, %v621_v45  ;;  %v2124_v58 = vmul.u32.u64.low %v803_v24, %v802_v52  ;;  %v2125_v43 = vmul.u32.u64.high %v803_v24, %v802_v52, %v2124_v58 }
  0x8c   :  { %v1597_v22 = vpop.eup %1596  ;;  %v199_v60 = vsel %vm189_vm0, nan, %v198_v54  ;;  %vm402_vm12 = vcmp.eq.s32.totalorder %v2057_v1, 2  ;;  %vm2132_vm13 = vcmp.le.f32.partialorder %v548_v17, 0.7853982  ;;  %v626_v55 = vshll.u32 %v625_v29, 23 }
  0x8d   :  { %v1536_v0 = vadd.s32 4294967169, %v1005_v50  ;;  %v1599_v4 = vpop.eup %1598  ;;  %v403_v62 = vxor.u32 2147483648, %v1597_v22  ;;  %v2136_v63 = vand.u32 3, %v500_v20  ;;  %v810_v12 = vmul.u32 %v803_v24, %v794_v56 }
  0x8e   :  { %v813_v5 = vadd.s32 1, %v2115_v53  ;;  %v400_v10 = vxor.u32 2147483648, %v1599_v4  ;;  %v627_v13 = vor.u32 4788187, %v626_v55  ;;  %v630_v59 = vcvt.s32.f32 %v623_v34 }
  0x8f   :  { %v634_v15 = vsub.s32 4, %v2018_v27  ;;  %v404_v19 = vsel %vm402_vm12, %v403_v62, %v1599_v4  ;;  %v511_v23 = vmul.f32 %v199_v60, %v199_v60  ;;  %vm812_vm14 = vc.u32 %v2125_v43, %v2114_v33 }
  0x90   :  { %v1001_v17 = vand.u32 2147483647, %v2028_v35  ;;  %v401_v20 = vsel %vm399_vm10, %v1597_v22, %v400_v10  ;;  %v628_v24 = vand.u32 2147483647, %v627_v13  ;;  %v814_v26 = vsel %vm812_vm14, %v813_v5, %v2115_v53 }
  0x91   :  { %v1011_v30 = vadd.s32 1, %v1536_v0  ;;  %v405_v31 = vsel %vm398_vm8, %v401_v20, %v404_v19  ;;  %vm502_vm15 = vcmp.lt.s32.totalorder %v2136_v63, 2  ;;  %vm503_vm1 = vcmp.eq.s32.totalorder %v2136_v63, 0 }
  0x92   :  { %v815_v16 = vadd.s32 %v814_v26, %v810_v12  ;;  %v406_v32 = vsel %vm396_vm5, nan, %v405_v31  ;;  %v301_v37 = vsel %vm299_vm9, %v196_v2, %v2068_v7  ;;  %v631_v39 = vmul.f32 %v630_v59, %v628_v24 }
  0x93   :  { %v635_v1 = vsel %vm550_vm7, %v634_v15, %v2018_v27  ;;  %v512_v45 = vmul.f32 %v511_v23, %v2143_v25  ;;  %v515_v46 = vmul.f32 %v406_v32, %v406_v32  ;;  %v298_v48 = vsel %vm296_vm6, %v2062_v21, %v193_v14 }
  0x94   :  { %v816_v54 = vadd.s32 536870912, %v815_v16  ;;  %vm506_vm2 = vcmp.eq.s32.totalorder %v2136_v63, 2  ;;  %v632_v47 = vxor.u32 2147483648, %v631_v39  ;;  %v1008_v2 = vand.u32 8388607, %v1001_v17 }
  0x95   :  { %vm1012_vm3 = vcmp.gt.s32.totalorder %v1011_v30, 0  ;;  %v516_v41 = vmul.f32 %v515_v46, %v2152_v28  ;;  %v2178_v50 = vadd.f32 %v2028_v35, %v1834_v8  ;;  %v302_v21 = vsel %vm295_vm11, %v298_v48, %v301_v37 }
  0x96   :  { %v2174_v27 = vshrl.u32 %v816_v54, 30  ;;  %v1013_v7 = vsel %vm1012_vm3, %v1011_v30, 0  ;;  %v633_v14 = vsel %vm550_vm7, %v632_v47, %v631_v39  ;;  %v637_v6 = vsel %vm2132_vm13, 0, %v635_v1 }
  0x97   :  { %v1015_v52 = vand.u32 31, %v1013_v7  ;;  %v2186_v53 = vadd.f32 %v516_v41, %v512_v45  ;;  %v636_v29 = vsel %vm2132_vm13, %v1850_v18, %v633_v14  ;;  %v744_v56 = vadd.s32 3, %v637_v6 }
  0x98   :  { %v818_v8 = vshll.u32 %v2174_v27, 30  ;;  %v505_v3 = vsel %vm503_vm1, %v1597_v22, %v400_v10  ;;  %v508_v34 = vsel %vm506_vm2, %v403_v62, %v1599_v4  ;;  %1600 = vcosq.f32 %v636_v29  ;;  %v90_v10 = vld [vmem:[#allocation8] sm:$0xff] }
  0x99   :  { %v1009_v58 = vor.u32 8388608, %v1008_v2  ;;  %v520_v60 = vsub.f32 1.0, %v2186_v53  ;;  %1602 = vsinq.f32 %v636_v29  ;;  %v2199_v0 = vsub.s32 32, %v1015_v52 }
  0x9a   :  { %v2197_v55 = vsub.s32 %v815_v16, %v818_v8  ;;  %v2201_v61 = vand.u32 3, %v637_v6  ;;  %v1208_v12 = vand.u32 2147483647, %v2178_v50  ;;  %v2206_v22 = vsel %vm189_vm0, nan, %v302_v21 }
  0x9b   :  { %v521_v5 = vmax.f32 %v520_v60, 0.0  ;;  %v2209_v62 = vand.u32 3, %v744_v56  ;;  %v2213_v13 = vsel %vm502_vm15, %v505_v3, %v508_v34  ;;  %v811_v59 = vadd.s32 %v2114_v33, %v2125_v43 }
  0x9c   :  { %v821_v4 = vsub.s32 0, %v2197_v55  ;;  %v1018_v15 = vshll.u32 %v1766_v36, %v1015_v52  ;;  %v2218_v19 = vshll.u32 %v1009_v58, 8  ;;  %v1019_v20 = vshrl.u32 %v1767_v38, %v2199_v0 }
  0x9d   :  { %v522_v23 = vmin.f32 %v521_v5, 1.0  ;;  %v1021_v24 = vshll.u32 %v1767_v38, %v1015_v52  ;;  %v1022_v63 = vshrl.u32 %v1768_v40, %v2199_v0  ;;  %v1024_v26 = vshll.u32 %v1768_v40, %v1015_v52 }
  0x9e   :  { %v1529_v9 = vmin.u32 %v821_v4, %v2197_v55  ;;  %v1025_v33 = vshrl.u32 %v1769_v42, %v2199_v0  ;;  %v1027_v43 = vshll.u32 %v1769_v42, %v1015_v52  ;;  %vm746_vm4 = vcmp.lt.s32.totalorder %v2209_v62, 2 }
  0x9f   :  { %537 = vst [vmem:[#allocation12] sm:$0xff] %v522_v23  ;;  %vm523_vm0 = vcmp.lt.f32.partialorder %v90_v10, %v522_v23  ;;  %v1028_v31 = vshrl.u32 %v1770_v44, %v2199_v0  ;;  %v1772_v16 = vmov 0.0   ;;  %vm747_vm6 = vcmp.eq.s32.totalorder %v2209_v62, 0 }
  0xa0   :  { %v823_v30 = vclz %v1529_v9  ;;  %v2234_v32 = vsel %vm523_vm0, 1.0, %v1772_v16  ;;  %vm750_vm7 = vcmp.eq.s32.totalorder %v2209_v62, 2  ;;  %v2238_v37 = vshrl.u32 %v1013_v7, 5 }
  0xa1   :  { %vm525_vm8 = vcmp.eq.f32.partialorder %v2234_v32, 0.0  ;;  %536 = vst [vmem:[#allocation11] sm:$0xff] %v2234_v32  ;;  %v1020_v1 = vor.u32 %v1019_v20, %v1018_v15  ;;  %v1211_v45 = vand.u32 2139095040, %v2178_v50  ;;  %vm757_vm9 = vcmp.lt.s32.totalorder %v1950_v49, 0 }
  0xa2   :  { %v1530_v39 = vadd.s32 4294967294, %v823_v30  ;;  %v526_v46 = vsel %vm525_vm8, %v2186_v53, %v520_v60  ;;  %v1023_v48 = vor.u32 %v1022_v63, %v1021_v24  ;;  %v1026_v54 = vor.u32 %v1025_v33, %v1024_v26 }
  0xa3   :  { %v1029_v47 = vor.u32 %v1028_v31, %v1027_v43  ;;  %v527_v2 = vmax.f32 %v526_v46, 1e-12  ;;  %v1030_v41 = vshll.u32 %v1770_v44, %v1015_v52  ;;  %v1031_v7 = vshrl.u32 %v1771_v51, %v2199_v0 }
  0xa4   :  { %vm1531_vm10 = vcmp.lt.s32.totalorder %v1530_v39, 0  ;;  %vm1033_vm11 = vcmp.lt.s32.totalorder %v2238_v37, 1  ;;  %vm1035_vm12 = vcmp.lt.s32.totalorder %v2238_v37, 3  ;;  %vm1036_vm13 = vcmp.lt.s32.totalorder %v2238_v37, 4 }
  0xa5   :  { %v826_v21 = vsel %vm1531_vm10, 0, %v1530_v39  ;;  %v2251_v14 = vpop.eup %1600  ;;  %1604 = vrcp.f32 %v527_v2  ;;  %vm2255_vm14 = vcmp.le.f32.partialorder %v755_v57, 0.7853982  ;;  %v841_v34 = vsub.s32 4, %v2174_v27 }
  0xa6   :  { %v827_v52 = vsub.s32 32, %v826_v21  ;;  %v828_v29 = vshll.u32 %v2197_v55, %v826_v21  ;;  %v831_v8 = vsub.s32 4294967266, %v826_v21  ;;  %v2260_v56 = vpop.eup %1602  ;;  %v647_v3 = vxor.u32 2147483648, %v2251_v14 }
  0xa7   :  { %vm1034_vm15 = vcmp.lt.s32.totalorder %v2238_v37, 2  ;;  %v1042_v58 = vsel %vm1036_vm13, %v1029_v47, 920167782  ;;  %vm640_vm1 = vweird.f32 %v1850_v18  ;;  %v644_v57 = vxor.u32 2147483648, %v2260_v56 }
  0xa8   :  { %v829_v60 = vshrl.u32 %v811_v59, %v827_v52  ;;  %v832_v5 = vadd.s32 127, %v831_v8  ;;  %v1041_v55 = vsel %vm1033_vm11, %v1020_v1, %v1023_v48  ;;  %v752_v4 = vsel %vm750_vm7, %v647_v3, %v2260_v56 }
  0xa9   :  { %v1017_v10 = vshrl.u32 %v1766_v36, %v2199_v0  ;;  %v1032_v15 = vor.u32 %v1031_v7, %v1030_v41  ;;  %v1043_v23 = vsel %vm1035_vm12, %v1026_v54, %v1042_v58  ;;  %v749_v59 = vsel %vm747_vm6, %v2251_v14, %v644_v57 }
  0xaa   :  { %v830_v9 = vor.u32 %v829_v60, %v828_v29  ;;  %v833_v20 = vshll.u32 %v832_v5, 23  ;;  %v1038_v24 = vsel %vm1036_vm13, %v1026_v54, 2102212464  ;;  %v510_v63 = vsel %vm396_vm5, nan, %v2213_v13 }
  0xab   :  { %v753_v0 = vsel %vm746_vm4, %v749_v59, %v752_v4  ;;  %v1044_v26 = vsel %vm1034_vm15, %v1041_v55, %v1043_v23  ;;  %v1212_v33 = vshrl.u32 %v1211_v45, 23  ;;  %v842_v31 = vsel %vm757_vm9, %v841_v34, %v2174_v27 }
  0xac   :  { %v834_v43 = vor.u32 4788187, %v833_v20  ;;  %v837_v30 = vcvt.s32.f32 %v830_v9  ;;  %v1045_v39 = vsel %vm1033_vm11, %v1023_v48, %v1026_v54  ;;  %v513_v11 = vmul.f32 %v2206_v22, %v2206_v22 }
  0xad   :  { %v1037_v62 = vsel %vm1033_vm11, %v1017_v10, %v1020_v1  ;;  %v1039_v13 = vsel %vm1035_vm12, %v1023_v48, %v1038_v24  ;;  %v1046_v45 = vsel %vm1036_vm13, %v1032_v15, 1326507024  ;;  %v517_v54 = vmul.f32 %v510_v63, %v510_v63 }
  0xae   :  { %v835_v46 = vand.u32 2147483647, %v834_v43  ;;  %v1047_v2 = vsel %vm1035_vm12, %v1029_v47, %v1046_v45  ;;  %v2306_v27 = vmul.u32.u64.low %v2218_v19, %v1044_v26  ;;  %v2307_v41 = vmul.u32.u64.high %v2218_v19, %v1044_v26, %v2306_v27 }
  0xaf   :  { %vm642_vm5 = vcmp.lt.s32.totalorder %v2201_v61, 2  ;;  %v844_v22 = vsel %vm2255_vm14, 0, %v842_v31  ;;  %v1048_v1 = vsel %vm1034_vm15, %v1045_v39, %v1047_v2  ;;  %v1544_v48 = vadd.s32 4294967169, %v1212_v33 }
  0xb0   :  { %v838_v7 = vmul.f32 %v837_v30, %v835_v46  ;;  %v1040_v21 = vsel %vm1034_vm15, %v1037_v62, %v1039_v13  ;;  %v2318_v47 = vmul.u32.u64.low %v2218_v19, %v1048_v1  ;;  %v2319_v52 = vmul.u32.u64.high %v2218_v19, %v1048_v1, %v2318_v47 }
  0xb1   :  { %vm643_vm2 = vcmp.eq.s32.totalorder %v2201_v61, 0  ;;  %vm646_vm3 = vcmp.eq.s32.totalorder %v2201_v61, 2  ;;  %v754_v29 = vsel %vm640_vm1, nan, %v753_v0  ;;  %v1218_v8 = vadd.s32 1, %v1544_v48 }
  0xb2   :  { %v514_v34 = vmul.f32 %v513_v11, %v2143_v25  ;;  %v530_v58 = vsub.f32 1.0, %v2234_v32  ;;  %v839_v60 = vxor.u32 2147483648, %v838_v7  ;;  %v1059_v37 = vadd.s32 1, %v2307_v41  ;;  %v2328_v5 = vpop.eup %1604 }
  0xb3   :  { %v518_v55 = vmul.f32 %v517_v54, %v2152_v28  ;;  %v2331_v4 = vand.u32 3, %v844_v22  ;;  %v1056_v10 = vmul.u32 %v2218_v19, %v1040_v21  ;;  %vm1219_vm0 = vcmp.gt.s32.totalorder %v1218_v8, 0 }
  0xb4   :  { %v531_v15 = vmul.f32 %v2328_v5, %v2186_v53  ;;  %v840_v25 = vsel %vm757_vm9, %v839_v60, %v838_v7  ;;  %v951_v23 = vadd.s32 3, %v844_v22  ;;  %v964_v9 = vmul.f32 %v754_v29, %v754_v29 }
  0xb5   :  { %v648_v20 = vsel %vm646_vm3, %v647_v3, %v2260_v56  ;;  %v843_v28 = vsel %vm2255_vm14, %v1950_v49, %v840_v25  ;;  %vm1058_vm4 = vc.u32 %v2319_v52, %v2306_v27  ;;  %v1220_v19 = vsel %vm1219_vm0, %v1218_v8, 0 }
  0xb6   :  { %v2346_v59 = vmul.f32 %v531_v15, %v530_v58  ;;  %v645_v53 = vsel %vm643_vm2, %v2251_v14, %v644_v57  ;;  %1606 = vcosq.f32 %v843_v28  ;;  %v1060_v24 = vsel %vm1058_vm4, %v1059_v37, %v2307_v41 }
  0xb7   :  { %1608 = vsinq.f32 %v843_v28  ;;  %v1061_v63 = vadd.s32 %v1060_v24, %v1056_v10  ;;  %v1215_v56 = vand.u32 8388607, %v1208_v12  ;;  %v1222_v6 = vand.u32 31, %v1220_v19 }
  0xb8   :  { %v533_v3 = vadd.f32 %v518_v55, %v514_v34  ;;  %v2354_v0 = vand.u32 3, %v951_v23  ;;  %v2357_v26 = vmul.f32 %v964_v9, %v2346_v59  ;;  %v1221_v33 = vshrl.u32 %v1220_v19, 5 }
  0xb9   :  { %v1062_v43 = vadd.s32 536870912, %v1061_v63  ;;  %v1223_v30 = vsub.s32 32, %v1222_v6  ;;  %v1225_v14 = vshll.u32 %v1766_v36, %v1222_v6  ;;  %v1228_v57 = vshll.u32 %v1767_v38, %v1222_v6 }
  0xba   :  { %v649_v31 = vsel %vm642_vm5, %v645_v53, %v648_v20  ;;  %v1231_v39 = vshll.u32 %v1768_v40, %v1222_v6  ;;  %v1234_v11 = vshll.u32 %v1769_v42, %v1222_v6  ;;  %v1237_v62 = vshll.u32 %v1770_v44, %v1222_v6 }
  0xbb   :  { %vm853_vm6 = vcmp.eq.s32.totalorder %v2331_v4, 2  ;;  %v2367_v13 = vshrl.u32 %v1062_v43, 30  ;;  %v1216_v45 = vor.u32 8388608, %v1215_v56  ;;  %v1226_v46 = vshrl.u32 %v1767_v38, %v1223_v30 }
  0xbc   :  { %v1229_v2 = vshrl.u32 %v1768_v40, %v1223_v30  ;;  %vm850_vm7 = vcmp.eq.s32.totalorder %v2331_v4, 0  ;;  %v1232_v61 = vshrl.u32 %v1769_v42, %v1223_v30  ;;  %v1235_v41 = vshrl.u32 %v1770_v44, %v1223_v30 }
  0xbd   :  { %v1238_v54 = vshrl.u32 %v1771_v51, %v1223_v30  ;;  %vm1240_vm8 = vcmp.lt.s32.totalorder %v1221_v33, 1  ;;  %vm849_vm9 = vcmp.lt.s32.totalorder %v2331_v4, 2  ;;  %vm953_vm10 = vcmp.lt.s32.totalorder %v2354_v0, 2 }
  0xbe   :  { %v1064_v22 = vshll.u32 %v2367_v13, 30  ;;  %v1224_v1 = vshrl.u32 %v1766_v36, %v1223_v30  ;;  %v1227_v38 = vor.u32 %v1226_v46, %v1225_v14  ;;  %v1230_v48 = vor.u32 %v1229_v2, %v1228_v57 }
  0xbf   :  { %vm847_vm11 = vweird.f32 %v1950_v49  ;;  %v1233_v40 = vor.u32 %v1232_v61, %v1231_v39  ;;  %v1236_v7 = vor.u32 %v1235_v41, %v1234_v11  ;;  %v1239_v42 = vor.u32 %v1238_v54, %v1237_v62 }
  0xc0   :  { %vm1242_vm12 = vcmp.lt.s32.totalorder %v1221_v33, 3  ;;  %v650_v44 = vsel %vm640_vm1, nan, %v649_v31  ;;  %v1065_v51 = vsub.s32 %v1061_v63, %v1064_v22  ;;  %vm1241_vm13 = vcmp.lt.s32.totalorder %v1221_v33, 2 }
  0xc1   :  { %vm1243_vm14 = vcmp.lt.s32.totalorder %v1221_v33, 4  ;;  %v1248_v47 = vsel %vm1240_vm8, %v1227_v38, %v1230_v48  ;;  %v1256_v8 = vshll.u32 %v1216_v45, 8  ;;  %vm954_vm15 = vcmp.eq.s32.totalorder %v2354_v0, 0 }
  0xc2   :  { %v1245_v21 = vsel %vm1243_vm14, %v1233_v40, 2102212464  ;;  %v1249_v29 = vsel %vm1243_vm14, %v1236_v7, 920167782  ;;  %v1067_v36 = vsub.s32 0, %v1065_v51  ;;  %v1244_v34 = vsel %vm1240_vm8, %v1224_v1, %v1227_v38 }
  0xc3   :  { %v1250_v58 = vsel %vm1242_vm12, %v1233_v40, %v1249_v29  ;;  %v1246_v60 = vsel %vm1242_vm12, %v1230_v48, %v1245_v21  ;;  %v1252_v37 = vsel %vm1240_vm8, %v1230_v48, %v1233_v40  ;;  %v1253_v55 = vsel %vm1243_vm14, %v1239_v42, 1326507024  ;;  %v1607_v10 = vpop.eup %1606 }
  0xc4   :  { %v1251_v18 = vsel %vm1241_vm13, %v1248_v47, %v1250_v58  ;;  %v534_v15 = vmul.f32 %v2328_v5, %v533_v3  ;;  %v962_v25 = vmul.f32 %v650_v44, %v650_v44  ;;  %vm957_vm1 = vcmp.eq.s32.totalorder %v2354_v0, 2  ;;  %v1609_v9 = vpop.eup %1608 }
  0xc5   :  { %v1537_v23 = vmin.u32 %v1067_v36, %v1065_v51  ;;  %v854_v20 = vxor.u32 2147483648, %v1607_v10  ;;  %v1254_v28 = vsel %vm1242_vm12, %v1236_v7, %v1253_v55  ;;  %v851_v24 = vxor.u32 2147483648, %v1609_v9 }
  0xc6   :  { %v2392_v19 = vmul.u32.u64.low %v1256_v8, %v1251_v18  ;;  %v2393_v53 = vmul.u32.u64.high %v1256_v8, %v1251_v18, %v2392_v19  ;;  %v1247_v56 = vsel %vm1241_vm13, %v1244_v34, %v1246_v60  ;;  %v1255_v6 = vsel %vm1241_vm13, %v1252_v37, %v1254_v28  ;;  %v541_v34 = vld [vmem:[#allocation8 + $0x8] sm:$0xff] }
  0xc7   :  { %v1069_v63 = vclz %v1537_v23  ;;  %v855_v5 = vsel %vm853_vm6, %v854_v20, %v1609_v9  ;;  %v959_v3 = vsel %vm957_vm1, %v854_v20, %v1609_v9  ;;  %v852_v14 = vsel %vm850_vm7, %v1607_v10, %v851_v24 }
  0xc8   :  { %v2400_v43 = vmul.u32.u64.low %v1256_v8, %v1255_v6  ;;  %v2401_v30 = vmul.u32.u64.high %v1256_v8, %v1255_v6, %v2400_v43  ;;  %v956_v57 = vsel %vm954_vm15, %v1607_v10, %v851_v24  ;;  %v1057_v31 = vadd.s32 %v2306_v27, %v2319_v52 }
  0xc9   :  { %v1538_v39 = vadd.s32 4294967294, %v1069_v63  ;;  %v535_v33 = vmul.f32 %v534_v15, %v2234_v32  ;;  %v856_v11 = vsel %vm849_vm9, %v852_v14, %v855_v5  ;;  %v960_v62 = vsel %vm953_vm10, %v956_v57, %v959_v3 }
  0xca   :  { %v1266_v45 = vadd.s32 1, %v2393_v53  ;;  %v857_v46 = vsel %vm847_vm11, nan, %v856_v11  ;;  %v961_v2 = vsel %vm847_vm11, nan, %v960_v62  ;;  %v1263_v61 = vmul.u32 %v1256_v8, %v1247_v56 }
  0xcb   :  { %vm1539_vm5 = vcmp.lt.s32.totalorder %v1538_v39, 0  ;;  %v963_v27 = vmul.f32 %v962_v25, %v2346_v59  ;;  %v966_v52 = vmul.f32 %v857_v46, %v857_v46  ;;  %v968_v32 = vmul.f32 %v961_v2, %v961_v2 }
  0xcc   :  { %v1072_v41 = vsel %vm1539_vm5, 0, %v1538_v39  ;;  %vm1265_vm2 = vc.u32 %v2401_v30, %v2392_v19  ;;  %vm1003_vm4 = vcmp.lt.s32.totalorder %v2028_v35, 0  ;;  %vm2436_vm6 = vcmp.le.f32.partialorder %v1001_v17, 0.7853982 }
  0xcd   :  { %v1073_v4 = vsub.s32 32, %v1072_v41  ;;  %v1074_v54 = vshll.u32 %v1065_v51, %v1072_v41  ;;  %v1077_v22 = vsub.s32 4294967266, %v1072_v41  ;;  %v967_v0 = vmul.f32 %v966_v52, %v535_v33 }
  0xce   :  { %v969_v1 = vmul.f32 %v968_v32, %v535_v33  ;;  %v1267_v38 = vsel %vm1265_vm2, %v1266_v45, %v2393_v53  ;;  %v1264_v63 = vadd.s32 %v2392_v19, %v2401_v30  ;;  %v1087_v57 = vsub.s32 4, %v2367_v13 }
  0xcf   :  { %v1075_v48 = vshrl.u32 %v1057_v31, %v1073_v4  ;;  %v1078_v49 = vadd.s32 127, %v1077_v22  ;;  %v1268_v40 = vadd.s32 %v1267_v38, %v1263_v61  ;;  %v2423_v7 = vadd.f32 %v967_v0, %v963_v27 }
  0xd0   :  { %v984_v59 = vadd.f32 %v969_v1, %v2357_v26  ;;  %v1088_v30 = vsel %vm1003_vm4, %v1087_v57, %v2367_v13  ;;  %vm1210_vm8 = vcmp.lt.s32.totalorder %v2178_v50, 0  ;;  %vm2459_vm9 = vcmp.le.f32.partialorder %v1208_v12, 0.7853982 }
  0xd1   :  { %v1076_v42 = vor.u32 %v1075_v48, %v1074_v54  ;;  %v1079_v44 = vshll.u32 %v1078_v49, 23  ;;  %v1269_v21 = vadd.s32 536870912, %v1268_v40  ;;  %v971_v51 = vsub.f32 1.0, %v2423_v7 }
  0xd2   :  { %v1090_v61 = vsel %vm2436_vm6, 0, %v1088_v30  ;;  %vm1093_vm1 = vweird.f32 %v2028_v35 }
  0xd3   :  { %v1080_v47 = vor.u32 4788187, %v1079_v44  ;;  %v1083_v29 = vcvt.s32.f32 %v1076_v42  ;;  %v1270_v8 = vshrl.u32 %v1269_v21, 30  ;;  %v972_v36 = vmax.f32 %v971_v51, 0.0 }
  0xd4   :  { %v1197_v32 = vadd.s32 3, %v1090_v61  ;;  %v1094_v54 = vand.u32 3, %v1090_v61 }
  0xd5   :  { %v1081_v58 = vand.u32 2147483647, %v1080_v47  ;;  %v1271_v60 = vshll.u32 %v1270_v8, 30  ;;  %v973_v18 = vmin.f32 %v972_v36, 1.0  ;;  %v1294_v13 = vsub.s32 4, %v1270_v8 }
  0xd6   :  { %v1198_v1 = vand.u32 3, %v1197_v32  ;;  %vm1096_vm10 = vcmp.eq.s32.totalorder %v1094_v54, 0  ;;  %vm1099_vm11 = vcmp.eq.s32.totalorder %v1094_v54, 2  ;;  %vm1095_vm14 = vcmp.lt.s32.totalorder %v1094_v54, 2 }
  0xd7   :  { %v1084_v37 = vmul.f32 %v1083_v29, %v1081_v58  ;;  %v1272_v55 = vsub.s32 %v1268_v40, %v1271_v60  ;;  %990 = vst [vmem:[#allocation12 + $0x8] sm:$0xff] %v973_v18  ;;  %vm974_vm3 = vcmp.lt.f32.partialorder %v541_v34, %v973_v18  ;;  %v1295_v38 = vsel %vm1210_vm8, %v1294_v13, %v1270_v8 }
  0xd8   :  { %v2428_v10 = vsel %vm974_vm3, 1.0, %v1772_v16  ;;  %v1297_v49 = vsel %vm2459_vm9, 0, %v1295_v38  ;;  %vm1200_vm12 = vcmp.eq.s32.totalorder %v1198_v1, 0  ;;  %vm1203_vm13 = vcmp.eq.s32.totalorder %v1198_v1, 2 }
  0xd9   :  { %v1274_v26 = vsub.s32 0, %v1272_v55  ;;  %vm976_vm0 = vcmp.eq.f32.partialorder %v2428_v10, 0.0  ;;  %988 = vst [vmem:[#allocation11 + $0x8] sm:$0xff] %v2428_v10  ;;  %v1085_v25 = vxor.u32 2147483648, %v1084_v37  ;;  %v1404_v40 = vadd.s32 3, %v1297_v49 }
  0xda   :  { %v977_v15 = vsel %vm976_vm0, %v2423_v7, %v971_v51  ;;  %vm1199_vm15 = vcmp.lt.s32.totalorder %v1198_v1, 2  ;;  %v1301_v51 = vand.u32 3, %v1297_v49  ;;  %v981_v36 = vsub.f32 1.0, %v2428_v10 }
  0xdb   :  { %v1545_v23 = vmin.u32 %v1274_v26, %v1272_v55  ;;  %v978_v9 = vmax.f32 %v977_v15, 1e-12  ;;  %v1086_v53 = vsel %vm1003_vm4, %v1085_v25, %v1084_v37  ;;  %v1405_v47 = vand.u32 3, %v1404_v40 }
  0xdc   :  { %v1089_v56 = vsel %vm2436_vm6, %v2028_v35, %v1086_v53  ;;  %vm1306_vm5 = vcmp.eq.s32.totalorder %v1301_v51, 2  ;;  %vm1300_vm3 = vweird.f32 %v2178_v50  ;;  %vm1303_vm0 = vcmp.eq.s32.totalorder %v1301_v51, 0 }
  0xdd   :  { %v1276_v20 = vclz %v1545_v23  ;;  %1610 = vrcp.f32 %v978_v9  ;;  %vm1410_vm2 = vcmp.eq.s32.totalorder %v1405_v47, 2  ;;  %vm1407_vm4 = vcmp.eq.s32.totalorder %v1405_v47, 0 }
  0xde   :  { %1612 = vcosq.f32 %v1089_v56  ;;  %vm1302_vm6 = vcmp.lt.s32.totalorder %v1301_v51, 2 }
  0xdf   :  { %v1546_v24 = vadd.s32 4294967294, %v1276_v20  ;;  %1614 = vsinq.f32 %v1089_v56 }
  0xe1   :  { %vm1547_vm7 = vcmp.lt.s32.totalorder %v1546_v24, 0 }
  0xe2   :  { %v1279_v6 = vsel %vm1547_vm7, 0, %v1546_v24  ;;  %vm1406_vm7 = vcmp.lt.s32.totalorder %v1405_v47, 2 }
  0xe3   :  { %v1280_v5 = vsub.s32 32, %v1279_v6  ;;  %v1281_v3 = vshll.u32 %v1272_v55, %v1279_v6  ;;  %v1284_v43 = vsub.s32 4294967266, %v1279_v6 }
  0xe5   :  { %v1282_v17 = vshrl.u32 %v1264_v63, %v1280_v5  ;;  %v1285_v14 = vadd.s32 127, %v1284_v43 }
  0xe7   :  { %v1283_v31 = vor.u32 %v1282_v17, %v1281_v3  ;;  %v1286_v39 = vshll.u32 %v1285_v14, 23 }
  0xe9   :  { %v1287_v33 = vor.u32 4788187, %v1286_v39  ;;  %v1290_v11 = vcvt.s32.f32 %v1283_v31  ;;  %v994_v39 = vld [vmem:[#allocation8 + $0x10] sm:$0xff] }
  0xea   :  { %v1611_v19 = vpop.eup %1610 }
  0xeb   :  { %v1288_v62 = vand.u32 2147483647, %v1287_v33  ;;  %v985_v45 = vmul.f32 %v1611_v19, %v984_v59  ;;  %v1613_v4 = vpop.eup %1612  ;;  %v982_v34 = vmul.f32 %v1611_v19, %v2423_v7 }
  0xec   :  { %v1615_v0 = vpop.eup %1614  ;;  %v1100_v48 = vxor.u32 2147483648, %v1613_v4 }
  0xed   :  { %v1291_v46 = vmul.f32 %v1290_v11, %v1288_v62  ;;  %v2452_v2 = vmul.f32 %v985_v45, %v2428_v10  ;;  %v1097_v12 = vxor.u32 2147483648, %v1615_v0  ;;  %v983_v26 = vmul.f32 %v982_v34, %v981_v36 }
  0xee   :  { %v1101_v42 = vsel %vm1099_vm11, %v1100_v48, %v1615_v0  ;;  %v1205_v21 = vsel %vm1203_vm13, %v1100_v48, %v1615_v0 }
  0xef   :  { %v1292_v52 = vxor.u32 2147483648, %v1291_v46  ;;  %v1098_v59 = vsel %vm1096_vm10, %v1613_v4, %v1097_v12  ;;  %v1202_v44 = vsel %vm1200_vm12, %v1613_v4, %v1097_v12 }
  0xf0   :  { %v1102_v29 = vsel %vm1095_vm14, %v1098_v59, %v1101_v42  ;;  %v1206_v8 = vsel %vm1199_vm15, %v1202_v44, %v1205_v21 }
  0xf1   :  { %v1293_v41 = vsel %vm1210_vm8, %v1292_v52, %v1291_v46  ;;  %v1103_v60 = vsel %vm1093_vm1, nan, %v1102_v29  ;;  %v1207_v18 = vsel %vm1093_vm1, nan, %v1206_v8 }
  0xf2   :  { %v1296_v22 = vsel %vm2459_vm9, %v2178_v50, %v1293_v41  ;;  %v1415_v25 = vmul.f32 %v1103_v60, %v1103_v60  ;;  %v1417_v23 = vmul.f32 %v1207_v18, %v1207_v18 }
  0xf3   :  { %1616 = vcosq.f32 %v1296_v22 }
  0xf4   :  { %1618 = vsinq.f32 %v1296_v22  ;;  %v1416_v63 = vmul.f32 %v1415_v25, %v983_v26  ;;  %v1418_v6 = vmul.f32 %v1417_v23, %v983_v26 }
 0x100   :  { %v1617_v58 = vpop.eup %1616 }
 0x101   :  { %v1619_v37 = vpop.eup %1618  ;;  %v1307_v55 = vxor.u32 2147483648, %v1617_v58 }
 0x102   :  { %v1304_v35 = vxor.u32 2147483648, %v1619_v37 }
 0x103   :  { %v1308_v15 = vsel %vm1306_vm5, %v1307_v55, %v1619_v37  ;;  %v1412_v10 = vsel %vm1410_vm2, %v1307_v55, %v1619_v37 }
 0x104   :  { %v1305_v7 = vsel %vm1303_vm0, %v1617_v58, %v1304_v35  ;;  %v1409_v9 = vsel %vm1407_vm4, %v1617_v58, %v1304_v35 }
 0x105   :  { %v1309_v20 = vsel %vm1302_vm6, %v1305_v7, %v1308_v15  ;;  %v1413_v28 = vsel %vm1406_vm7, %v1409_v9, %v1412_v10 }
 0x106   :  { %v1310_v53 = vsel %vm1300_vm3, nan, %v1309_v20  ;;  %v1414_v24 = vsel %vm1300_vm3, nan, %v1413_v28 }
 0x107   :  { %v1419_v56 = vmul.f32 %v1310_v53, %v1310_v53  ;;  %v1421_v5 = vmul.f32 %v1414_v24, %v1414_v24 }
 0x109   :  { %v1420_v3 = vmul.f32 %v1419_v56, %v2452_v2  ;;  %v1422_v43 = vmul.f32 %v1421_v5, %v2452_v2 }
 0x10b   :  { %v1423_v17 = vadd.f32 %v1420_v3, %v1416_v63  ;;  %v1437_v14 = vadd.f32 %v1422_v43, %v1418_v6 }
 0x10d   :  { %v1424_v57 = vsub.f32 1.0, %v1423_v17 }
 0x10f   :  { %v1425_v31 = vmax.f32 %v1424_v57, 0.0 }
 0x111   :  { %v1426_v33 = vmin.f32 %v1425_v31, 1.0 }
 0x113   :  { %1443 = vst [vmem:[#allocation12 + $0x10] sm:$0xff] %v1426_v33  ;;  %vm1427_vm8 = vcmp.lt.f32.partialorder %v994_v39, %v1426_v33 }
 0x114   :  { %v1428_v50 = vsel %vm1427_vm8, 1.0, %v1772_v16 }
 0x115   :  { %1701 = shalt.err (!%p1698_p5)
}
 0x116   :  { %1476 = dma.vmem_to_hbm [thread:$0]  %s1471_s16, 384, %s2502_s5, [#allocation13], %s1762_s26, %s1762_s26, %s1763_s27   ;;  %vm1429_vm9 = vcmp.eq.f32.partialorder %v1428_v50, 0.0  ;;  %1441 = vst [vmem:[#allocation11 + $0x10] sm:$0xff] %v1428_v50 }
 0x117   :  { %v1430_v11 = vsel %vm1429_vm9, %v1423_v17, %v1424_v57  ;;  %s1710_s22 = scalar_lea.vmem %s1459_s18, 384  ;;  %p1715_p7 = scmp.lt.s32.totalorder %s1459_s18, %s1459_s18 }
 0x118   :  { %p1711_p6 = scmp.ne.s32.totalorder %s1459_s18, %s1710_s22  ;;  %p1716_p8 = scmp.lt.s32.totalorder %s1710_s22, %s1710_s22 }
 0x11a   :  { %p1717_p9 = por %p1716_p8, %p1715_p7 }
 0x11c   :  { %p1718_p10 = pnand %p1717_p9, %p1711_p6 }
 0x11e   :  { %1721 = shalt.err (!%p1718_p10)
}
 0x11f   :  { %1464 = dma.vmem_to_hbm [thread:$0]  %s1459_s18, 384, %s2501_s4, [#allocation5], %s1762_s26, %s1762_s26, %s1763_s27   ;;  %v1431_v16 = vmax.f32 %v1430_v11, 1e-12  ;;  %v1434_v19 = vsub.f32 1.0, %v1428_v50 }
 0x120   :  { %s1775_s5 = smov [#allocation14]  }
 0x121   :  { %1620 = vrcp.f32 %v1431_v16  ;;  %s1482_s25 = sshll.u32 %s1775_s5, 4  ;;  %s1483_s25 = int_to_ptr.vmem [resolvable:$true] %s1482_s25 }
 0x122   :  { %s1730_s28 = scalar_lea.vmem %s1483_s25, 256  ;;  %p1735_p12 = scmp.lt.s32.totalorder %s1483_s25, %s1483_s25 }
 0x123   :  { %p1731_p11 = scmp.ne.s32.totalorder %s1483_s25, %s1730_s28  ;;  %p1736_p13 = scmp.lt.s32.totalorder %s1730_s28, %s1730_s28 }
 0x125   :  { %p1737_p0 = por %p1736_p13, %p1735_p12 }
 0x127   :  { %p1738_p1 = pnand %p1737_p0, %p1731_p11 }
 0x12e   :  { %v1621_v30 = vpop.eup %1620 }
 0x12f   :  { %v1435_v62 = vmul.f32 %v1621_v30, %v1423_v17  ;;  %v1438_v45 = vmul.f32 %v1621_v30, %v1437_v14 }
 0x131   :  { %v1436_v46 = vmul.f32 %v1435_v62, %v1434_v19  ;;  %v1439_v2 = vmul.f32 %v1438_v45, %v1428_v50 }
 0x133   :  { %1451 = vst [vmem:[#allocation14] sm:$0xff] %v1436_v46  ;;  %1452 = vst [vmem:[#allocation14 + $0x8] sm:$0xff] %v1439_v2 }
 0x134   :  { %1741 = shalt.err (!%p1738_p1)
}
 0x135   :  { %1488 = dma.vmem_to_hbm [thread:$0]  %s1483_s25, 256, %s2503_s6, [#allocation13], %s1762_s26, %s1762_s26, %s1763_s27  }
 0x136   :  { %1756 = dma.done.wait [#allocation5], 384  }
 0x137   :  { %1757 = vsyncadd [#allocation5], 4294966912 }
 0x138   :  { %1758 = dma.done.wait [#allocation13], 640  }
 0x139   :  { %1759 = vsyncadd [#allocation13], 4294966656 }
 0x13a   :  { %1498 = vsyncpa [#allocation4], 1 }
 0x13b   :  { %1499 = vsyncpa [#allocation9], 1 }
 0x13c   :  { %1500 = vsyncpa [#allocation5], 1 }
 0x13d   :  { %1501 = vsyncpa [#allocation13], 1 }
 0x13e   :  { %1502 = vsyncpa [#allocation6], 1 }

</bundles_post_ra>
